<compile_context>
chip_gen: v5e
topology: v5e:2x2
jax: 0.10.0
libtpu: 0.0.40
codegen_flags: <defaults>
</compile_context>

<pallas_src>
import functools
import math

import jax
import jax.numpy as jnp
from jax import lax
from jax.experimental import pallas as pl
from jax.experimental.pallas import tpu as pltpu


def _round_up(x, m):
    return ((x + m - 1) // m) * m


def _fast_reciprocal(x):
    # EUP approximate reciprocal + one Newton-Raphson refinement step:
    # keeps the divide off the VALU slot while staying ~f32 accurate.
    r = pl.reciprocal(x, approx=True)
    return r * (jnp.float32(2.0) - x * r)


def _memory_unit_kernel(*refs, shrink_thres, mem_dim, has_wt, write_att,
                        matmul_dtype):
    idx = 0
    x_ref = refs[idx]; idx += 1                 # (tm, fea_p)
    w_ref = refs[idx]; idx += 1                 # (mem_p, fea_p), VMEM-resident
    wt_ref = None
    if has_wt:
        wt_ref = refs[idx]; idx += 1            # (fea_p, mem_p), VMEM-resident
    out_ref = refs[idx]; idx += 1               # (tm, fea_p)
    att_ref = refs[idx] if write_att else None  # (tm, mem_p)

    x = x_ref[...]
    w = w_ref[...]
    mem_p = w.shape[0]

    if matmul_dtype is not None:
        x_mm = x.astype(matmul_dtype)
        w_mm = w.astype(matmul_dtype)
    else:
        x_mm = x
        w_mm = w

    # att_weight = F.linear(x, W) = x @ W^T  (f32 accumulation on the MXU).
    if has_wt:
        wt = wt_ref[...]
        wt_mm = wt.astype(matmul_dtype) if matmul_dtype is not None else wt
        s = jnp.dot(x_mm, wt_mm, preferred_element_type=jnp.float32)
    else:
        s = lax.dot_general(x_mm, w_mm, (((1,), (1,)), ((), ())),
                            preferred_element_type=jnp.float32)

    # Zero-padded memory slots would get logit 0 and leak into the softmax;
    # add a (1, mem_p) -inf-ish f32 bias (static no-op when mem_dim is aligned).
    if mem_p != mem_dim:
        col = lax.broadcasted_iota(jnp.int32, (1, mem_p), 1)
        s = s + jnp.where(col < mem_dim, jnp.float32(0.0), jnp.float32(-1e30))

    # softmax over the memory dimension (dim=1 in the PyTorch module)
    s = s - jnp.max(s, axis=-1, keepdims=True)
    e = jnp.exp(s)
    att = e * _fast_reciprocal(jnp.sum(e, axis=-1, keepdims=True))

    if shrink_thres > 0.0:
        lambd = jnp.float32(shrink_thres)
        eps = jnp.float32(1e-12)
        shifted = att - lambd
        # hard_shrink_relu: relu(att - l) * att / (|att - l| + eps)
        att = (jnp.maximum(shifted, 0.0) * att
               * _fast_reciprocal(jnp.abs(shifted) + eps))
        # F.normalize(p=1, dim=1); att >= 0 after relu-shrink, so no abs().
        denom = jnp.maximum(jnp.sum(att, axis=-1, keepdims=True),
                            jnp.float32(1e-12))
        # Exact reciprocal: (tm, 1) vector is essentially free and avoids
        # chaining two approximate reciprocals.
        att = att * (jnp.float32(1.0) / denom)

    # output = F.linear(att, W^T) = att @ W (natural MXU layout).
    att_mm = (att.astype(matmul_dtype) if matmul_dtype is not None
              else att.astype(w.dtype))
    out = jnp.dot(att_mm, w_mm, preferred_element_type=jnp.float32)

    out_ref[...] = out.astype(out_ref.dtype)
    if write_att:
        att_ref[...] = att.astype(att_ref.dtype)


def memory_unit_forward(x, weight, shrink_thres=0.0025, *, tm=None,
                        return_att=True, matmul_in_bf16=False):
    """x: (N, fea_dim), weight: (mem_dim, fea_dim) -> dict(output[, att])."""
    n, fea_dim = x.shape
    mem_dim, fea_dim_w = weight.shape
    assert fea_dim == fea_dim_w

    out_dtype = x.dtype
    itemsize = jnp.dtype(x.dtype).itemsize
    w_itemsize = jnp.dtype(weight.dtype).itemsize
    sublane = {4: 8, 2: 16, 1: 32}.get(itemsize, 8)

    # Lane-dense padding: last dims to multiples of 128.
    fea_p = _round_up(fea_dim, 128)
    mem_p = _round_up(mem_dim, 128)

    # Per-TensorCore physical VMEM (128 MiB v5e/v6e, 64 MiB v7x); conservative
    # fallback if the query is unavailable.
    phys_vmem = 64 * 1024 * 1024
    try:
        phys_vmem = int(getattr(pltpu.get_tpu_info(), "vmem_capacity_bytes",
                                phys_vmem))
    except Exception:
        pass
    vmem_cap = int(phys_vmem * 0.80)   # headroom for compiler-managed scratch

    if tm is None:
        # Bigger row tiles on big-VMEM parts (fewer grid steps, better M occ.).
        tm = 512 if phys_vmem >= 100 * 1024 * 1024 else 256

    def budget(tm_eff, w_copies):
        b = 2 * tm_eff * fea_p * itemsize          # x tiles (double buffered)
        b += 2 * tm_eff * fea_p * itemsize         # output tiles
        if return_att:
            b += 2 * tm_eff * mem_p * itemsize     # att tiles
        b += w_copies * mem_p * fea_p * w_itemsize  # resident weight(s)
        b += 3 * tm_eff * mem_p * 4                # f32 softmax temporaries
        b += tm_eff * fea_p * 4                    # f32 output accumulator
        return b

    tm_eff = _round_up(min(tm, _round_up(n, sublane)), sublane)

    # Static residency / tile selection (no try/except compile fallback):
    # prefer W + W^T resident (both matmuls read a natural layout); shrink the
    # row tile before dropping W^T.
    has_wt = True
    while budget(tm_eff, 2 if has_wt else 1) > vmem_cap:
        if tm_eff > max(sublane, 64):
            tm_eff = _round_up(tm_eff // 2, sublane)
        elif has_wt:
            has_wt = False
        else:
            # TODO(synk): add a mem_dim-tiled (two-pass softmax) variant for
            # weights that do not fit in VMEM at all; not needed for MemAE sizes.
            raise NotImplementedError(
                "MemoryUnit weight does not fit in VMEM; mem_dim tiling is "
                "not implemented.")

    n_p = _round_up(n, tm_eff)
    grid_m = n_p // tm_eff            # no even-grid padding: ceil-split is fine

    x_p = x if (n_p == n and fea_p == fea_dim) else jnp.pad(
        x, ((0, n_p - n), (0, fea_p - fea_dim)))
    w_p = weight if (mem_p == mem_dim and fea_p == fea_dim) else jnp.pad(
        weight, ((0, mem_p - mem_dim), (0, fea_p - fea_dim)))

    operands = [x_p, w_p]
    if has_wt:
        operands.append(jnp.transpose(w_p))    # one-off transpose in the wrapper

    matmul_dtype = None
    if matmul_in_bf16 and x.dtype == jnp.float32:
        matmul_dtype = jnp.bfloat16

    kernel = functools.partial(
        _memory_unit_kernel, shrink_thres=float(shrink_thres), mem_dim=mem_dim,
        has_wt=has_wt, write_att=return_att, matmul_dtype=matmul_dtype)

    in_specs = [pl.BlockSpec((tm_eff, fea_p), lambda i: (i, 0)),     # x row tile
                pl.BlockSpec(memory_space=pltpu.MemorySpace.VMEM)]   # W resident
    if has_wt:
        in_specs.append(pl.BlockSpec(memory_space=pltpu.MemorySpace.VMEM))  # W^T

    out_shapes = [jax.ShapeDtypeStruct((n_p, fea_p), out_dtype)]
    out_specs = [pl.BlockSpec((tm_eff, fea_p), lambda i: (i, 0))]
    if return_att:
        out_shapes.append(jax.ShapeDtypeStruct((n_p, mem_p), out_dtype))
        out_specs.append(pl.BlockSpec((tm_eff, mem_p), lambda i: (i, 0)))

    need = budget(tm_eff, 2 if has_wt else 1)
    default_scoped = 32 * 1024 * 1024
    if need <= default_scoped:
        vmem_limit = None     # default scoped limit suffices; never shrink it
    else:
        vmem_limit = int(min(vmem_cap, max(int(need * 1.25), default_scoped)))

    cost = pl.CostEstimate(
        flops=int(4 * n_p * fea_p * mem_p),                 # two matmuls
        transcendentals=int(n_p * mem_p),                   # exp
        bytes_accessed=int(n_p * fea_p * itemsize * 2       # x + out
                           + (n_p * mem_p * itemsize if return_att else 0)
                           + (2 if has_wt else 1) * mem_p * fea_p * w_itemsize),
    )

    call = pl.pallas_call(
        kernel,
        out_shape=tuple(out_shapes),
        grid_spec=pltpu.PrefetchScalarGridSpec(
            num_scalar_prefetch=0,
            grid=(grid_m,),
            in_specs=in_specs,
            out_specs=out_specs,
        ),
        compiler_params=pltpu.CompilerParams(
            dimension_semantics=("parallel",),
            vmem_limit_bytes=vmem_limit,
        ),
        cost_estimate=cost,
    )
    results = call(*operands)

    out = results[0][:n, :fea_dim]
    if return_att:
        return {"output": out, "att": results[1][:n, :mem_dim]}
    return {"output": out}


def memory_unit_ref(x, weight, shrink_thres=0.0025):
    """Pure-JAX reference mirroring the PyTorch forward."""
    s = x @ weight.T
    s = s - jnp.max(s, axis=1, keepdims=True)
    e = jnp.exp(s)
    att = e / jnp.sum(e, axis=1, keepdims=True)
    if shrink_thres > 0:
        shifted = att - shrink_thres
        att = jnp.maximum(shifted, 0.0) * att / (jnp.abs(shifted) + 1e-12)
        att = att / jnp.maximum(jnp.sum(jnp.abs(att), axis=1, keepdims=True), 1e-12)
    out = att @ weight
    return {"output": out, "att": att}


if __name__ == "__main__":
    SHRINK = 0.0025
    key = jax.random.PRNGKey(0)

    def run_case(case_id, n, fea_dim, mem_dim, tm=None, return_att=True):
        kx, kw = jax.random.split(jax.random.fold_in(key, case_id))
        # Same init scheme as reset_parameters(): uniform(-stdv, stdv),
        # stdv = 1/sqrt(fea_dim).
        stdv = 1.0 / math.sqrt(fea_dim)
        weight = jax.random.uniform(kw, (mem_dim, fea_dim), jnp.float32,
                                    minval=-stdv, maxval=stdv)
        x = jax.random.normal(kx, (n, fea_dim), jnp.float32)

        result = memory_unit_forward(x, weight, shrink_thres=SHRINK, tm=tm,
                                     return_att=return_att)
        result = jax.block_until_ready(result)

        ref = memory_unit_ref(x, weight, shrink_thres=SHRINK)
        assert jnp.allclose(result["output"], ref["output"], atol=1e-4, rtol=1e-4)
        if return_att:
            assert jnp.allclose(result["att"], ref["att"], atol=1e-4, rtol=1e-4)

    # Lane-aligned, odd multi-tile grid (no dummy-tile padding, W + W^T resident).
    run_case(0, n=384, fea_dim=128, mem_dim=256, tm=128)
    # Small unaligned case (padding + padded-slot softmax bias path).
    run_case(1, n=16, fea_dim=32, mem_dim=64)
    # Output-only case (skips the att HBM writeback).
    run_case(2, n=64, fea_dim=64, mem_dim=128, return_att=False)

    print("KERNEL_OK")
</pallas_src>

<mosaic_0001>
module attributes {stable_mosaic.version = 11 : i64} {
  func.func @_memory_unit_kernel(%arg0: i32, %arg1: memref<128x128xf32, #tpu.memory_space<vmem>>, %arg2: memref<256x128xf32, #tpu.memory_space<vmem>>, %arg3: memref<128x256xf32, #tpu.memory_space<vmem>>, %arg4: memref<128x128xf32, #tpu.memory_space<vmem>>, %arg5: memref<128x256xf32, #tpu.memory_space<vmem>>) attributes {dimension_semantics = [#tpu.dimension_semantics<parallel>], iteration_bounds = array<i64: 3>, scalar_prefetch = 0 : i64, scratch_operands = 0 : i64, tpu.core_type = #tpu.core_type<tc>, window_params = [{transform_indices = @transform_0, window_bounds = array<i64: 128, 128>}, {pipeline_mode = #tpu.pipeline_mode<synchronous>, transform_indices = @transform_1, window_bounds = array<i64: 256, 128>}, {pipeline_mode = #tpu.pipeline_mode<synchronous>, transform_indices = @transform_2, window_bounds = array<i64: 128, 256>}, {transform_indices = @transform_3, window_bounds = array<i64: 128, 128>}, {transform_indices = @transform_4, window_bounds = array<i64: 128, 256>}]} {
    %c0 = arith.constant 0 : index
    %c0_0 = arith.constant 0 : index
    %0 = vector.load %arg1[%c0, %c0_0] : memref<128x128xf32, #tpu.memory_space<vmem>>, vector<128x128xf32>
    %c0_1 = arith.constant 0 : index
    %c0_2 = arith.constant 0 : index
    %1 = vector.load %arg2[%c0_1, %c0_2] : memref<256x128xf32, #tpu.memory_space<vmem>>, vector<256x128xf32>
    %c0_3 = arith.constant 0 : index
    %c0_4 = arith.constant 0 : index
    %2 = vector.load %arg3[%c0_3, %c0_4] : memref<128x256xf32, #tpu.memory_space<vmem>>, vector<128x256xf32>
    %cst = arith.constant dense<0.000000e+00> : vector<128x256xf32>
    %3 = tpu.matmul %0, %2, %cst {dimension_numbers = #tpu.dot_dimension_numbers<[1], [0], [0], [1], [0, 0, 1, 1], [], []>} : vector<128x128xf32>, vector<128x256xf32>, vector<128x256xf32> -> vector<128x256xf32>
    %cst_5 = arith.constant dense<0xFF800000> : vector<128xf32>
    %4 = vector.multi_reduction <maximumf>, %3, %cst_5 [1] : vector<128x256xf32> to vector<128xf32>
    %5 = vector.shape_cast %4 : vector<128xf32> to vector<128x1xf32>
    %6 = vector.broadcast %5 : vector<128x1xf32> to vector<128x256xf32>
    %7 = arith.subf %3, %6 : vector<128x256xf32>
    %8 = math.exp %7 : vector<128x256xf32>
    %cst_6 = arith.constant dense<0.000000e+00> : vector<128xf32>
    %9 = vector.multi_reduction <add>, %8, %cst_6 [1] : vector<128x256xf32> to vector<128xf32>
    %10 = vector.shape_cast %9 : vector<128xf32> to vector<128x1xf32>
    %11 = tpu.reciprocal %10 {approx = true} : vector<128x1xf32> -> vector<128x1xf32>
    %12 = arith.mulf %10, %11 : vector<128x1xf32>
    %cst_7 = arith.constant 2.000000e+00 : f32
    %13 = vector.broadcast %cst_7 : f32 to vector<128x1xf32>
    %14 = arith.subf %13, %12 : vector<128x1xf32>
    %15 = arith.mulf %11, %14 : vector<128x1xf32>
    %16 = vector.broadcast %15 : vector<128x1xf32> to vector<128x256xf32>
    %17 = arith.mulf %8, %16 : vector<128x256xf32>
    %cst_8 = arith.constant 2.500000e-03 : f32
    %18 = vector.broadcast %cst_8 : f32 to vector<128x256xf32>
    %19 = arith.subf %17, %18 : vector<128x256xf32>
    %cst_9 = arith.constant 0.000000e+00 : f32
    %20 = vector.broadcast %cst_9 : f32 to vector<128x256xf32>
    %21 = arith.maximumf %19, %20 : vector<128x256xf32>
    %22 = arith.mulf %21, %17 : vector<128x256xf32>
    %23 = math.absf %19 : vector<128x256xf32>
    %cst_10 = arith.constant 9.99999996E-13 : f32
    %24 = vector.broadcast %cst_10 : f32 to vector<128x256xf32>
    %25 = arith.addf %23, %24 : vector<128x256xf32>
    %26 = tpu.reciprocal %25 {approx = true} : vector<128x256xf32> -> vector<128x256xf32>
    %27 = arith.mulf %25, %26 : vector<128x256xf32>
    %cst_11 = arith.constant 2.000000e+00 : f32
    %28 = vector.broadcast %cst_11 : f32 to vector<128x256xf32>
    %29 = arith.subf %28, %27 : vector<128x256xf32>
    %30 = arith.mulf %26, %29 : vector<128x256xf32>
    %31 = arith.mulf %22, %30 : vector<128x256xf32>
    %cst_12 = arith.constant dense<0.000000e+00> : vector<128xf32>
    %32 = vector.multi_reduction <add>, %31, %cst_12 [1] : vector<128x256xf32> to vector<128xf32>
    %33 = vector.shape_cast %32 : vector<128xf32> to vector<128x1xf32>
    %cst_13 = arith.constant 9.99999996E-13 : f32
    %34 = vector.broadcast %cst_13 : f32 to vector<128x1xf32>
    %35 = arith.maximumf %33, %34 : vector<128x1xf32>
    %cst_14 = arith.constant 1.000000e+00 : f32
    %36 = vector.broadcast %cst_14 : f32 to vector<128x1xf32>
    %37 = arith.divf %36, %35 : vector<128x1xf32>
    %38 = vector.broadcast %37 : vector<128x1xf32> to vector<128x256xf32>
    %39 = arith.mulf %31, %38 : vector<128x256xf32>
    %cst_15 = arith.constant dense<0.000000e+00> : vector<128x128xf32>
    %40 = tpu.matmul %39, %1, %cst_15 {dimension_numbers = #tpu.dot_dimension_numbers<[1], [0], [0], [1], [0, 0, 1, 1], [], []>} : vector<128x256xf32>, vector<256x128xf32>, vector<128x128xf32> -> vector<128x128xf32>
    %c0_16 = arith.constant 0 : index
    %c0_17 = arith.constant 0 : index
    %41 = vector.load %arg4[%c0_16, %c0_17] : memref<128x128xf32, #tpu.memory_space<vmem>>, vector<128x128xf32>
    tpu.vector_store %arg4[%c0_16, %c0_17], %40 {strides = array<i32>} : memref<128x128xf32, #tpu.memory_space<vmem>>, vector<128x128xf32>,
    %c0_18 = arith.constant 0 : index
    %c0_19 = arith.constant 0 : index
    %42 = vector.load %arg5[%c0_18, %c0_19] : memref<128x256xf32, #tpu.memory_space<vmem>>, vector<128x256xf32>
    tpu.vector_store %arg5[%c0_18, %c0_19], %39 {strides = array<i32>} : memref<128x256xf32, #tpu.memory_space<vmem>>, vector<128x256xf32>,
    return
  }
  func.func @transform_0(%arg0: i32) -> (i32, i32) {
    %c0_i32 = arith.constant 0 : i32
    %c0_i32_0 = arith.constant 0 : i32
    return %arg0, %c0_i32 : i32, i32
  }
  func.func @transform_1(%arg0: i32) -> (i32, i32) {
    %c0_i32 = arith.constant 0 : i32
    %c0_i32_0 = arith.constant 0 : i32
    %c0_i32_1 = arith.constant 0 : i32
    return %c0_i32, %c0_i32_0 : i32, i32
  }
  func.func @transform_2(%arg0: i32) -> (i32, i32) {
    %c0_i32 = arith.constant 0 : i32
    %c0_i32_0 = arith.constant 0 : i32
    %c0_i32_1 = arith.constant 0 : i32
    return %c0_i32, %c0_i32_0 : i32, i32
  }
  func.func @transform_3(%arg0: i32) -> (i32, i32) {
    %c0_i32 = arith.constant 0 : i32
    %c0_i32_0 = arith.constant 0 : i32
    return %arg0, %c0_i32 : i32, i32
  }
  func.func @transform_4(%arg0: i32) -> (i32, i32) {
    %c0_i32 = arith.constant 0 : i32
    %c0_i32_0 = arith.constant 0 : i32
    return %arg0, %c0_i32 : i32, i32
  }
}

</mosaic_0001>

<bundles_post_ra>
// kernel: tpu_custom_call.1
= control target key start
LH: loop header
LB: loop body
LE: loop exit
PB: predicated region body
PF: predicated region fallthrough
CT: control target
= control target key end

     0   :  { %10 = vsyncpa [#allocation3], 0  ;;  %s3256_s0 = inlined_call_operand.hbm [shape: f32[384,128], index: 0, kind: input, shape index: {}]   ;;  %s3257_s1 = inlined_call_operand.hbm [shape: f32[256,128], index: 1, kind: input, shape index: {}]   ;;  %s3258_s2 = inlined_call_operand.hbm [shape: f32[128,256], index: 2, kind: input, shape index: {}]   ;;  %s3259_s3 = inlined_call_operand.hbm [shape: f32[384,128], index: 3, kind: output, shape index: {0}]   ;;  %s3260_s4 = inlined_call_operand.hbm [shape: f32[384,256], index: 4, kind: output, shape index: {1}]  }
   0x1   :  { %12 = vsyncpa [#allocation3 + $0x1], 0 }
   0x2   :  { %13 = vsyncpa [#allocation6], 0 }
   0x3   :  { %14 = vsyncpa [#allocation4], 0 }
   0x4   :  { %16 = vsyncpa [#allocation4 + $0x1], 0 }
   0x5   :  { %17 = vsyncpa [#allocation10], 0 }
   0x6   :  { %19 = vsyncpa [#allocation10 + $0x1], 0  ;;  %s2321_s15 = smov 0   ;;  %s2323_s16 = smov 0  }
   0x7   :  { %s2325_s17 = smov 0   ;;  %s2327_s18 = smov 0  }
   0x8 LB: > { %s2342_s19 = sadd.s32 4294967295, %s2284_s18   ;;  %s1761_s20 = sadd.s32 4294967294, %s2284_s18   ;;  %s2284_s18 = sphi %s2327_s18, %s3279_s18   ;;  %s2280_s17 = sphi %s2325_s17, %s3278_s17   ;;  %s2276_s16 = sphi %s2323_s16, %s3277_s16   ;;  %s2272_s15 = sphi %s2321_s15, %s3276_s15  }
   0x9   : > { %p45_p0 = scmp.ne.s32.totalorder %s2276_s16, %s2272_s15  ;;  %p46_p1 = scmp.eq.s32.totalorder %s2342_s19, 0 }
   0xa   : > { %p111_p2 = scmp.eq.s32.totalorder %s2342_s19, 2  ;;  %p117_p3 = scmp.eq.s32.totalorder %s1761_s20, 2 }
   0xb   : > { %p2351_p4 = por %p46_p1, %p45_p0  ;;  %p1762_p5 = scmp.ge.s32.totalorder %s2284_s18, 1 }
   0xc   : > { %p2356_p6 = por %p117_p3, %p45_p0  ;;  %p150_p7 = scmp.lt.s32.totalorder %s2284_s18, 4 }
   0xd   : > { %s161_s25 = sshll.u32 %s3257_s1, 4  ;;  %s2286_s27 = smov [#allocation5]   ;;  %s162_s25 = int_to_ptr.hbm [resolvable:$true] %s161_s25 }
   0xe   : > { %p2364_p8 = pnand %p1762_p5, %p150_p7  ;;  %s163_s28 = sshll.u32 %s2286_s27, 4  ;;  %s164_s28 = int_to_ptr.vmem [resolvable:$true] %s163_s28 }
   0xf   : > { %s175_s5 = sshll.u32 %s3258_s2, 4  ;;  %s2287_s6 = smov 128   ;;  %s176_s5 = int_to_ptr.hbm [resolvable:$true] %s175_s5 }
  0x10   : > { %p1834_p9 = pneg %p2364_p8  ;;  %s2288_s7 = smov 8  }
  0x11   : > { %s2289_s8 = smov [#allocation7]   ;;  %s2290_s10 = smov 256  }
  0x12   : > { %p1835_p10 = pnand %p1834_p9, %p46_p1  ;;  %s177_s9 = sshll.u32 %s2289_s8, 4  ;;  %s178_s9 = int_to_ptr.vmem [resolvable:$true] %s177_s9 }
  0x13   : > { %s2291_s11 = smov 16   ;;  %s2379_s12 = sadd.s32 1, %s2284_s18  }
  0x14   : > { %1837 = dma.hbm_to_vmem [thread:$0]  (!%p1835_p10), %s162_s25, 4096, %s164_s28, [#allocation6], %s2287_s6, %s2287_s6, %s2288_s7  }
  0x15   : > { %1840 = dma.hbm_to_vmem [thread:$0]  (!%p1835_p10), %s176_s5, 4096, %s178_s9, [#allocation6], %s2290_s10, %s2290_s10, %s2291_s11  }
  0x16   : > { %s29_s13 = ssub.s32 %s2284_s18, %s2379_s12  ;;  %s32_s14 = sadd.s32 1, %s2280_s17 }
  0x17   : > { %p30_p11 = scmp.eq.s32.totalorder %s29_s13, 0  ;;  %p39_p12 = scmp.ne.s32.totalorder %s2280_s17, %s2276_s16 }
  0x18   : > { %p40_p13 = scmp.eq.s32.totalorder %s2284_s18, 0  ;;  %p1854_p5 = scmp.lt.s32.totalorder %s2284_s18, 3 }
  0x19   : > { %s2388_s20 = scalar_select %p30_p11, %s2280_s17, %s32_s14  }
  0x1a   : > { %p41_p0 = por %p40_p13, %p39_p12  ;;  %p2392_p3 = por %p111_p2, %p39_p12 }
  0x1b   : > { %s191_s24 = sand.u32 1, %s2280_s17   ;;  %s1816_s27 = sshll.u32 %s2284_s18, 7 }
  0x1c   : > { %s1766_s25 = sshll.u32 %s191_s24, 7  ;;  %s200_s30 = scalar_lea.hbm %s3256_s0, %s1816_s27 }
  0x1d   : > { %s195_s5 = scalar_lea.vmem [#allocation2], %s1766_s25  ;;  %s201_s9 = sshll.u32 %s200_s30, 4  ;;  %s202_s9 = int_to_ptr.hbm [resolvable:$true] %s201_s9 }
  0x1e   : > { %s203_s8 = sshll.u32 %s195_s5, 4  ;;  %p2402_p7 = pnand %p1854_p5, %p41_p0  ;;  %s204_s8 = int_to_ptr.vmem [resolvable:$true] %s203_s8 }
  0x1f   : > { %s192_s11 = scalar_lea.sflag [#allocation3], %s191_s24  ;;  %s2152_s13 = sshra.s32 %s202_s9, 4  ;;  %s2153_s13 = int_to_ptr.hbm [resolvable:$true] %s2152_s13 }
  0x20   : > { %s2154_s14 = scalar_lea.hbm %s2153_s13, 128  ;;  %p2156_p9 = pneg %p2402_p7 }
  0x21   : > { %p2155_p2 = scmp.ne.s32.totalorder %s2153_s13, %s2154_s14  ;;  %s2159_s28 = scalar_lea.hbm %s3256_s0, 384 }
  0x22   : > { %p2160_p12 = scmp.lt.s32.totalorder %s2153_s13, %s3256_s0  ;;  %p2161_p13 = scmp.lt.s32.totalorder %s2159_s28, %s2154_s14 }
  0x23   : > { %p2157_p10 = pnand %p2156_p9, %p2155_p2 }
  0x24   : > { %p2162_p0 = por %p2161_p13, %p2160_p12 }
  0x25   : > { %p2158_p11 = pneg %p2157_p10 }
  0x27   : > { %p2163_p5 = pnand %p2162_p0, %p2158_p11 }
  0x29   : > { %2166 = shalt.err (!%p2163_p5)
}
  0x2a   : > { %1844 = dma.hbm_to_vmem [thread:$0]  (!%p2402_p7), %s202_s9, 2048, %s204_s8, %s192_s11, %s2287_s6, %s2287_s6, %s2288_s7  }
  0x2b   : > { %215 = sbr.rel (%p2364_p8) target bundleno = 989 (0x3dd), region = 32  ;;  %s2422_s24 = sand.u32 (!%p2364_p8), 1, %s2276_s16  }
  0x2c   : > { %s1770_s5 = sshll.u32 (!%p2364_p8), %s2422_s24, 7  ;;  %s218_s13 = scalar_lea.sflag (!%p2364_p8), [#allocation3], %s2422_s24 }
  0x2d   : > { %s2428_s14 = scalar_lea.vmem (!%p2364_p8), [#allocation2], %s1770_s5 }
  0x30   : > { %2255 = dma.done.wait (%p2351_p4), %s218_s13, 2048  }
  0x31   : > { %2257 = vsyncadd (%p2351_p4), %s218_s13, 4294965248 }
  0x32   : > { %2259 = dma.done.wait (%p46_p1), [#allocation6], 8192  }
  0x33   : > { %2261 = vsyncadd (%p46_p1), [#allocation6], 4294959104  ;;  %v343_v0 = vld [vmem:[#allocation7 + $0xf0] sm:$0xff]  ;;  %v344_v1 = vld [vmem:[#allocation7 + $0xf8] sm:$0xff]  ;;  %s1774_s21 = sshll.u32 %s2422_s24, 8  ;;  %s3157_s6 = scalar_lea.vmem [#allocation8], %s1770_s5 }
  0x34   : > { %v341_v2 = vld [vmem:[#allocation7 + $0xe0] sm:$0xff]  ;;  %345 = vmatpush.msra.mxu0 %v343_v0  ;;  %410 = vmatpush.msra.mxu1 %v344_v1  ;;  %v342_v3 = vld [vmem:[#allocation7 + $0xe8] sm:$0xff]  ;;  %v339_v4 = vld [vmem:[#allocation7 + $0xd0] sm:$0xff]  ;;  %s2877_s26 = scalar_lea.vmem [#allocation9], %s1774_s21  ;;  %s1819_s7 = sshll.u32 %s2342_s19, 8 }
  0x35   : > { %v340_v5 = vld [vmem:[#allocation7 + $0xd8] sm:$0xff]  ;;  %v337_v6 = vld [vmem:[#allocation7 + $0xc0] sm:$0xff]  ;;  %v338_v7 = vld [vmem:[#allocation7 + $0xc8] sm:$0xff]  ;;  %s1632_s10 = scalar_lea.hbm %s3260_s4, %s1819_s7  ;;  %s1633_s11 = sshll.u32 %s2877_s26, 4  ;;  %s1634_s11 = int_to_ptr.vmem [resolvable:$true] %s1633_s11 }
  0x36   : > { %346 = vmatpush.msra.mxu0 %v341_v2  ;;  %411 = vmatpush.msra.mxu1 %v342_v3  ;;  %v335_v8 = vld [vmem:[#allocation7 + $0xb0] sm:$0xff]  ;;  %v336_v9 = vld [vmem:[#allocation7 + $0xb8] sm:$0xff]  ;;  %v333_v10 = vld [vmem:[#allocation7 + $0xa0] sm:$0xff]  ;;  %s1635_s27 = sshll.u32 %s1632_s10, 4  ;;  %s1603_s25 = scalar_lea.sflag [#allocation10], %s2422_s24  ;;  %s1636_s27 = int_to_ptr.hbm [resolvable:$true] %s1635_s27 }
  0x37   : > { %v334_v11 = vld [vmem:[#allocation7 + $0xa8] sm:$0xff]  ;;  %v331_v12 = vld [vmem:[#allocation7 + $0x90] sm:$0xff]  ;;  %v332_v13 = vld [vmem:[#allocation7 + $0x98] sm:$0xff]  ;;  %s2196_s28 = sshra.s32 %s1636_s27, 4  ;;  %s2202_s13 = scalar_lea.hbm %s3260_s4, 768  ;;  %s2197_s28 = int_to_ptr.hbm [resolvable:$true] %s2196_s28 }
  0x38   : > { %347 = vmatpush.msra.mxu0 %v339_v4  ;;  %412 = vmatpush.msra.mxu1 %v340_v5  ;;  %v329_v14 = vld [vmem:[#allocation7 + $0x80] sm:$0xff]  ;;  %v330_v15 = vld [vmem:[#allocation7 + $0x88] sm:$0xff]  ;;  %v327_v16 = vld [vmem:[#allocation7 + $0x70] sm:$0xff]  ;;  %s2198_s29 = scalar_lea.hbm %s2197_s28, 256  ;;  %p2203_p7 = scmp.lt.s32.totalorder %s2197_s28, %s3260_s4 }
  0x39   : > { %v328_v17 = vld [vmem:[#allocation7 + $0x78] sm:$0xff]  ;;  %v325_v18 = vld [vmem:[#allocation7 + $0x60] sm:$0xff]  ;;  %v326_v19 = vld [vmem:[#allocation7 + $0x68] sm:$0xff]  ;;  %p2199_p1 = scmp.ne.s32.totalorder %s2197_s28, %s2198_s29  ;;  %p2204_p2 = scmp.lt.s32.totalorder %s2202_s13, %s2198_s29 }
  0x3a   : > { %348 = vmatpush.msra.mxu0 %v337_v6  ;;  %413 = vmatpush.msra.mxu1 %v338_v7  ;;  %v323_v20 = vld [vmem:[#allocation7 + $0x50] sm:$0xff]  ;;  %v324_v21 = vld [vmem:[#allocation7 + $0x58] sm:$0xff]  ;;  %v321_v22 = vld [vmem:[#allocation7 + $0x40] sm:$0xff] }
  0x3b   : > { %v322_v23 = vld [vmem:[#allocation7 + $0x48] sm:$0xff]  ;;  %v319_v24 = vld [vmem:[#allocation7 + $0x30] sm:$0xff]  ;;  %v320_v25 = vld [vmem:[#allocation7 + $0x38] sm:$0xff]  ;;  %p2200_p4 = pnand %p2199_p1, %p2392_p3  ;;  %p2205_p9 = por %p2204_p2, %p2203_p7 }
  0x3c   : > { %349 = vmatpush.msra.mxu0 %v335_v8  ;;  %414 = vmatpush.msra.mxu1 %v336_v9  ;;  %v317_v26 = vld [vmem:[#allocation7 + $0x20] sm:$0xff]  ;;  %v318_v27 = vld [vmem:[#allocation7 + $0x28] sm:$0xff]  ;;  %v315_v28 = vld [vmem:[#allocation7 + $0x10] sm:$0xff] }
  0x3d   : > { %v316_v29 = vld [vmem:[#allocation7 + $0x18] sm:$0xff]  ;;  %v313_v30 = vld [vmem:[#allocation7] sm:$0xff]  ;;  %v314_v31 = vld [vmem:[#allocation7 + $0x8] sm:$0xff]  ;;  %p2201_p8 = pneg %p2200_p4 }
  0x3e   : > { %350 = vmatpush.msra.mxu0 %v333_v10  ;;  %415 = vmatpush.msra.mxu1 %v334_v11  ;;  %v265_v32 = vld [vmem:[%s2428_s14] sm:$0xff]  ;;  %v266_v33 = vld [vmem:[%s2428_s14 + $0x8] sm:$0xff]  ;;  %v267_v34 = vld [vmem:[%s2428_s14 + $0x10] sm:$0xff] }
  0x3f   : > { %v268_v35 = vld [vmem:[%s2428_s14 + $0x18] sm:$0xff]  ;;  %v269_v36 = vld [vmem:[%s2428_s14 + $0x20] sm:$0xff]  ;;  %v270_v37 = vld [vmem:[%s2428_s14 + $0x28] sm:$0xff]  ;;  %p2206_p10 = pnand %p2205_p9, %p2201_p8 }
  0x40   : > { %351 = vmatpush.msra.mxu0 %v331_v12  ;;  %416 = vmatpush.msra.mxu1 %v332_v13  ;;  %v271_v38 = vld [vmem:[%s2428_s14 + $0x30] sm:$0xff]  ;;  %v272_v39 = vld [vmem:[%s2428_s14 + $0x38] sm:$0xff]  ;;  %v273_v40 = vld [vmem:[%s2428_s14 + $0x40] sm:$0xff] }
  0x41   : > { %v274_v41 = vld [vmem:[%s2428_s14 + $0x48] sm:$0xff]  ;;  %v275_v42 = vld [vmem:[%s2428_s14 + $0x50] sm:$0xff]  ;;  %v276_v46 = vld [vmem:[%s2428_s14 + $0x58] sm:$0xff] }
  0x42   : > { %352 = vmatpush.msra.mxu0 %v329_v14  ;;  %417 = vmatpush.msra.mxu1 %v330_v15  ;;  %v277_v50 = vld [vmem:[%s2428_s14 + $0x60] sm:$0xff]  ;;  %v278_v54 = vld [vmem:[%s2428_s14 + $0x68] sm:$0xff]  ;;  %v279_v58 = vld [vmem:[%s2428_s14 + $0x70] sm:$0xff] }
  0x43   : > { %v280_v62 = vld [vmem:[%s2428_s14 + $0x78] sm:$0xff] }
  0x44   : > { %353 = vmatpush.msra.mxu0 %v327_v16  ;;  %418 = vmatpush.msra.mxu1 %v328_v17 }
  0x46   : > { %354 = vmatpush.msra.mxu0 %v325_v18  ;;  %419 = vmatpush.msra.mxu1 %v326_v19 }
  0x48   : > { %355 = vmatpush.msra.mxu0 %v323_v20  ;;  %420 = vmatpush.msra.mxu1 %v324_v21 }
  0x4a   : > { %356 = vmatpush.msra.mxu0 %v321_v22  ;;  %421 = vmatpush.msra.mxu1 %v322_v23 }
  0x4c   : > { %357 = vmatpush.msra.mxu0 %v319_v24  ;;  %422 = vmatpush.msra.mxu1 %v320_v25 }
  0x4e   : > { %358 = vmatpush.msra.mxu0 %v317_v26  ;;  %423 = vmatpush.msra.mxu1 %v318_v27 }
  0x50   : > { %359 = vmatpush.msra.mxu0 %v315_v28  ;;  %424 = vmatpush.msra.mxu1 %v316_v29 }
  0x52   : > { %360 = vmatpush.msra.mxu0 %v313_v30  ;;  %425 = vmatpush.msra.mxu1 %v314_v31 }
  0x53   : > { %361 = vmatmul.f32.vlgmr.msra.gmra.mxu0 %v265_v32  ;;  %426 = vmatmul.f32.vlgmr.msra.gmra.mxu1 %v265_v32 }
  0x5b   : > { %364 = vmatmul.f32.gmra.mxu0 %v266_v33  ;;  %429 = vmatmul.f32.gmra.mxu1 %v266_v33 }
  0x63   : > { %367 = vmatmul.f32.gmra.mxu0 %v267_v34  ;;  %432 = vmatmul.f32.gmra.mxu1 %v267_v34 }
  0x6b   : > { %370 = vmatmul.f32.gmra.mxu0 %v268_v35  ;;  %435 = vmatmul.f32.gmra.mxu1 %v268_v35 }
  0x73   : > { %373 = vmatmul.f32.gmra.mxu0 %v269_v36  ;;  %438 = vmatmul.f32.gmra.mxu1 %v269_v36 }
  0x7b   : > { %376 = vmatmul.f32.gmra.mxu0 %v270_v37  ;;  %441 = vmatmul.f32.gmra.mxu1 %v270_v37 }
  0x83   : > { %379 = vmatmul.f32.gmra.mxu0 %v271_v38  ;;  %444 = vmatmul.f32.gmra.mxu1 %v271_v38 }
  0x8b   : > { %382 = vmatmul.f32.gmra.mxu0 %v272_v39  ;;  %447 = vmatmul.f32.gmra.mxu1 %v272_v39 }
  0x93   : > { %385 = vmatmul.f32.gmra.mxu0 %v273_v40  ;;  %450 = vmatmul.f32.gmra.mxu1 %v273_v40 }
  0x9b   : > { %388 = vmatmul.f32.gmra.mxu0 %v274_v41  ;;  %453 = vmatmul.f32.gmra.mxu1 %v274_v41 }
  0xa3   : > { %391 = vmatmul.f32.gmra.mxu0 %v275_v42  ;;  %456 = vmatmul.f32.gmra.mxu1 %v275_v42 }
  0xab   : > { %394 = vmatmul.f32.gmra.mxu0 %v276_v46  ;;  %459 = vmatmul.f32.gmra.mxu1 %v276_v46 }
  0xb3   : > { %397 = vmatmul.f32.gmra.mxu0 %v277_v50  ;;  %462 = vmatmul.f32.gmra.mxu1 %v277_v50 }
  0xbb   : > { %400 = vmatmul.f32.gmra.mxu0 %v278_v54  ;;  %465 = vmatmul.f32.gmra.mxu1 %v278_v54 }
  0xc3   : > { %403 = vmatmul.f32.gmra.mxu0 %v279_v58  ;;  %468 = vmatmul.f32.gmra.mxu1 %v279_v58 }
  0xcb   : > { %406 = vmatmul.f32.gmra.mxu0 %v280_v62  ;;  %471 = vmatmul.f32.gmra.mxu1 %v280_v62 }
  0xd0   : > { %v362_v43 = vpop.f32.mrf.mxu0  ;;  %v427_v44 = vpop.f32.mrf.mxu1 }
  0xd1   : > { %v475_v45 = vmax.f32 %v362_v43, %v427_v44 }
  0xd3   : > { %476 = vmax.xlane.f32.xlu0 %v475_v45 }
  0xd8   : > { %v365_v47 = vpop.f32.mrf.mxu0  ;;  %v430_v48 = vpop.f32.mrf.mxu1 }
  0xd9   : > { %v478_v49 = vmax.f32 %v365_v47, %v430_v48 }
  0xdb   : > { %479 = vmax.xlane.f32.xlu0 %v478_v49 }
  0xe0   : > { %v368_v51 = vpop.f32.mrf.mxu0  ;;  %v433_v52 = vpop.f32.mrf.mxu1 }
  0xe1   : > { %v481_v53 = vmax.f32 %v368_v51, %v433_v52 }
  0xe3   : > { %482 = vmax.xlane.f32.xlu1 %v481_v53 }
  0xe8   : > { %v2452_v55 = vpop.f32.mrf.mxu0  ;;  %v2454_v56 = vpop.f32.mrf.mxu1 }
  0xe9   : > { %v484_v57 = vmax.f32 %v2452_v55, %v2454_v56 }
  0xeb   : > { %485 = vmax.xlane.f32.xlu1 %v484_v57 }
  0xf0   : > { %v2459_v59 = vpop.f32.mrf.mxu0  ;;  %v2461_v60 = vpop.f32.mrf.mxu1 }
  0xf1   : > { %v487_v61 = vmax.f32 %v2459_v59, %v2461_v60 }
  0xf3   : > { %488 = vmax.xlane.f32.xlu2 %v487_v61 }
  0xf8   : > { %v2466_v63 = vpop.f32.mrf.mxu0  ;;  %v2468_v0 = vpop.f32.mrf.mxu1 }
  0xf9   : > { %v490_v1 = vmax.f32 %v2466_v63, %v2468_v0 }
  0xfb   : > { %491 = vmax.xlane.f32.xlu2 %v490_v1 }
 0x100   : > { %v2472_v2 = vpop.f32.mrf.mxu0  ;;  %v2474_v3 = vpop.f32.mrf.mxu1 }
 0x101   : > { %v493_v4 = vmax.f32 %v2472_v2, %v2474_v3 }
 0x103   : > { %494 = vmax.xlane.f32.xlu0 %v493_v4 }
 0x108   : > { %v2478_v5 = vpop.f32.mrf.mxu0  ;;  %v2480_v6 = vpop.f32.mrf.mxu1 }
 0x109   : > { %v496_v7 = vmax.f32 %v2478_v5, %v2480_v6 }
 0x10b   : > { %497 = vmax.xlane.f32.xlu2 %v496_v7 }
 0x110   : > { %v2484_v11 = vpop.f32.mrf.mxu0  ;;  %v2486_v12 = vpop.f32.mrf.mxu1 }
 0x111   : > { %v499_v31 = vmax.f32 %v2484_v11, %v2486_v12 }
 0x118   : > { %v2490_v21 = vpop.f32.mrf.mxu0  ;;  %v2494_v23 = vpop.f32.mrf.mxu1 }
 0x119   : > { %v502_v42 = vmax.f32 %v2490_v21, %v2494_v23 }
 0x120   : > { %v2506_v34 = vpop.f32.mrf.mxu0  ;;  %v2508_v35 = vpop.f32.mrf.mxu1 }
 0x121   : > { %v505_v53 = vmax.f32 %v2506_v34, %v2508_v35 }
 0x128   : > { %v2520_v45 = vpop.f32.mrf.mxu0 }
 0x146   : > { %v477_v8 = vpop.xlane.xlu0 %476 }
 0x147   : > { %v523_v9 = vsub.f32 %v362_v43, %v477_v8  ;;  %v524_v10 = vsub.f32 %v427_v44, %v477_v8 }
 0x149   : > { %v555_v13 = vmul.f32 1.442695, %v523_v9  ;;  %v557_v14 = vmul.f32 1.442695, %v524_v10 }
 0x14b   : > { %1900 = vpow2.f32 %v555_v13 }
 0x14c   : > { %1902 = vpow2.f32 %v557_v14 }
 0x14e   : > { %v480_v15 = vpop.xlane.xlu0 %479 }
 0x14f   : > { %v525_v16 = vsub.f32 %v365_v47, %v480_v15  ;;  %v526_v17 = vsub.f32 %v430_v48, %v480_v15  ;;  %v2522_v47 = vpop.f32.mrf.mxu1 }
 0x150   : > { %v508_v4 = vmax.f32 %v2520_v45, %v2522_v47 }
 0x151   : > { %v2488_v18 = vpop.eup %1900  ;;  %v559_v19 = vmul.f32 1.442695, %v525_v16  ;;  %v561_v20 = vmul.f32 1.442695, %v526_v17 }
 0x152   : > { %v2492_v22 = vpop.eup %1902 }
 0x153   : > { %1904 = vpow2.f32 %v559_v19  ;;  %v619_v24 = vadd.f32 %v2492_v22, %v2488_v18 }
 0x154   : > { %1906 = vpow2.f32 %v561_v20 }
 0x155   : > { %620 = vadd.xlane.f32.xlu1 %v619_v24 }
 0x156   : > { %v483_v25 = vpop.xlane.xlu1 %482 }
 0x157   : > { %v527_v26 = vsub.f32 %v368_v51, %v483_v25  ;;  %v528_v27 = vsub.f32 %v433_v52, %v483_v25 }
 0x159   : > { %v2498_v28 = vpop.eup %1904  ;;  %v563_v29 = vmul.f32 1.442695, %v527_v26  ;;  %v565_v30 = vmul.f32 1.442695, %v528_v27 }
 0x15a   : > { %v2502_v32 = vpop.eup %1906 }
 0x15b   : > { %1908 = vpow2.f32 %v563_v29  ;;  %v622_v33 = vadd.f32 %v2502_v32, %v2498_v28 }
 0x15c   : > { %1910 = vpow2.f32 %v565_v30 }
 0x15d   : > { %623 = vadd.xlane.f32.xlu0 %v622_v33  ;;  %500 = vmax.xlane.f32.xlu1 %v499_v31 }
 0x15e   : > { %v486_v36 = vpop.xlane.xlu1 %485 }
 0x15f   : > { %v529_v37 = vsub.f32 %v2452_v55, %v486_v36  ;;  %v530_v38 = vsub.f32 %v2454_v56, %v486_v36 }
 0x161   : > { %v2512_v39 = vpop.eup %1908  ;;  %v567_v40 = vmul.f32 1.442695, %v529_v37  ;;  %v569_v41 = vmul.f32 1.442695, %v530_v38 }
 0x162   : > { %v2516_v43 = vpop.eup %1910 }
 0x163   : > { %1912 = vpow2.f32 %v567_v40  ;;  %v625_v44 = vadd.f32 %v2516_v43, %v2512_v39 }
 0x164   : > { %1914 = vpow2.f32 %v569_v41 }
 0x165   : > { %626 = vadd.xlane.f32.xlu2 %v625_v44  ;;  %503 = vmax.xlane.f32.xlu0 %v502_v42 }
 0x166   : > { %v489_v46 = vpop.xlane.xlu2 %488 }
 0x167   : > { %v531_v48 = vsub.f32 %v2459_v59, %v489_v46  ;;  %v532_v49 = vsub.f32 %v2461_v60, %v489_v46  ;;  %v2536_v59 = vpop.f32.mrf.mxu0  ;;  %v2538_v60 = vpop.f32.mrf.mxu1 }
 0x168   : > { %v511_v15 = vmax.f32 %v2536_v59, %v2538_v60 }
 0x169   : > { %v2526_v50 = vpop.eup %1912  ;;  %v571_v51 = vmul.f32 1.442695, %v531_v48  ;;  %v573_v52 = vmul.f32 1.442695, %v532_v49 }
 0x16a   : > { %v2530_v54 = vpop.eup %1914 }
 0x16b   : > { %1916 = vpow2.f32 %v571_v51  ;;  %v628_v55 = vadd.f32 %v2530_v54, %v2526_v50 }
 0x16c   : > { %1918 = vpow2.f32 %v573_v52 }
 0x16d   : > { %629 = vadd.xlane.f32.xlu1 %v628_v55  ;;  %506 = vmax.xlane.f32.xlu2 %v505_v53 }
 0x16e   : > { %v492_v56 = vpop.xlane.xlu2 %491 }
 0x16f   : > { %v533_v57 = vsub.f32 %v2466_v63, %v492_v56  ;;  %v534_v58 = vsub.f32 %v2468_v0, %v492_v56  ;;  %v2556_v17 = vpop.f32.mrf.mxu0  ;;  %v2558_v19 = vpop.f32.mrf.mxu1 }
 0x170   : > { %v514_v29 = vmax.f32 %v2556_v17, %v2558_v19 }
 0x171   : > { %v2540_v61 = vpop.eup %1916  ;;  %v575_v62 = vmul.f32 1.442695, %v533_v57  ;;  %v577_v1 = vmul.f32 1.442695, %v534_v58 }
 0x172   : > { %v2544_v7 = vpop.eup %1918 }
 0x173   : > { %1920 = vpow2.f32 %v575_v62  ;;  %v631_v8 = vadd.f32 %v2544_v7, %v2540_v61 }
 0x174   : > { %1922 = vpow2.f32 %v577_v1 }
 0x175   : > { %632 = vadd.xlane.f32.xlu0 %v631_v8  ;;  %509 = vmax.xlane.f32.xlu1 %v508_v4 }
 0x176   : > { %v495_v63 = vpop.xlane.xlu0 %494 }
 0x177   : > { %v535_v0 = vsub.f32 %v2472_v2, %v495_v63  ;;  %v536_v9 = vsub.f32 %v2474_v3, %v495_v63  ;;  %v2572_v33 = vpop.f32.mrf.mxu0  ;;  %v2574_v36 = vpop.f32.mrf.mxu1 }
 0x179   : > { %v2550_v10 = vpop.eup %1920  ;;  %v579_v13 = vmul.f32 1.442695, %v535_v0  ;;  %v581_v14 = vmul.f32 1.442695, %v536_v9 }
 0x17a   : > { %v2554_v16 = vpop.eup %1922 }
 0x17b   : > { %1924 = vpow2.f32 %v579_v13  ;;  %v634_v20 = vadd.f32 %v2554_v16, %v2550_v10 }
 0x17c   : > { %1926 = vpow2.f32 %v581_v14 }
 0x17d   : > { %635 = vadd.xlane.f32.xlu2 %v634_v20  ;;  %512 = vmax.xlane.f32.xlu0 %v511_v15 }
 0x17e   : > { %v498_v2 = vpop.xlane.xlu2 %497 }
 0x17f   : > { %v537_v3 = vsub.f32 %v2478_v5, %v498_v2  ;;  %v538_v24 = vsub.f32 %v2480_v6, %v498_v2  ;;  %v517_v6 = vmax.f32 %v2572_v33, %v2574_v36  ;;  %v2584_v40 = vpop.f32.mrf.mxu0  ;;  %v2586_v41 = vpop.f32.mrf.mxu1 }
 0x180   : > { %v520_v42 = vmax.f32 %v2584_v40, %v2586_v41 }
 0x181   : > { %v2564_v25 = vpop.eup %1924  ;;  %v583_v26 = vmul.f32 1.442695, %v537_v3  ;;  %v585_v27 = vmul.f32 1.442695, %v538_v24 }
 0x182   : > { %v2568_v30 = vpop.eup %1926 }
 0x183   : > { %1928 = vpow2.f32 %v583_v26  ;;  %v637_v31 = vadd.f32 %v2568_v30, %v2564_v25 }
 0x184   : > { %1930 = vpow2.f32 %v585_v27 }
 0x185   : > { %638 = vadd.xlane.f32.xlu1 %v637_v31  ;;  %515 = vmax.xlane.f32.xlu2 %v514_v29 }
 0x189   : > { %v2576_v5 = vpop.eup %1928 }
 0x18a   : > { %v2580_v37 = vpop.eup %1930 }
 0x18b   : > { %v640_v38 = vadd.f32 %v2580_v37, %v2576_v5 }
 0x18d   : > { %641 = vadd.xlane.f32.xlu0 %v640_v38  ;;  %518 = vmax.xlane.f32.xlu1 %v517_v6 }
 0x195   : > { %521 = vmax.xlane.f32.xlu0 %v520_v42 }
 0x1c8   : > { %v621_v44 = vpop.xlane.xlu1 %620 }
 0x1c9   : > { %1932 = vrcp.f32 %v621_v44 }
 0x1cf   : > { %v1933_v46 = vpop.eup %1932 }
 0x1d0   : > { %v683_v48 = vmul.f32 %v1933_v46, %v621_v44  ;;  %v624_v49 = vpop.xlane.xlu0 %623  ;;  %v501_v51 = vpop.xlane.xlu1 %500 }
 0x1d1   : > { %1934 = vrcp.f32 %v624_v49  ;;  %v539_v52 = vsub.f32 %v2484_v11, %v501_v51  ;;  %v540_v53 = vsub.f32 %v2486_v12, %v501_v51 }
 0x1d2   : > { %v699_v55 = vsub.f32 2.0, %v683_v48 }
 0x1d3   : > { %v587_v56 = vmul.f32 1.442695, %v539_v52  ;;  %v589_v57 = vmul.f32 1.442695, %v540_v53 }
 0x1d4   : > { %v715_v58 = vmul.f32 %v1933_v46, %v699_v55 }
 0x1d5   : > { %1936 = vpow2.f32 %v587_v56 }
 0x1d6   : > { %v731_v62 = vmul.f32 %v2488_v18, %v715_v58  ;;  %v2594_v1 = vmul.f32 %v2492_v22, %v715_v58  ;;  %1938 = vpow2.f32 %v589_v57 }
 0x1d7   : > { %v1935_v4 = vpop.eup %1934 }
 0x1d8   : > { %v1775_v8 = vadd.f32 -0.0025, %v731_v62  ;;  %v2597_v63 = vadd.f32 -0.0025, %v2594_v1  ;;  %v684_v0 = vmul.f32 %v1935_v4, %v624_v49  ;;  %v627_v11 = vpop.xlane.xlu2 %626  ;;  %v504_v9 = vpop.xlane.xlu0 %503 }
 0x1d9   : > { %1940 = vrcp.f32 %v627_v11  ;;  %v541_v12 = vsub.f32 %v2490_v21, %v504_v9  ;;  %v542_v13 = vsub.f32 %v2494_v23, %v504_v9 }
 0x1da   : > { %v859_v14 = vand.u32 2147483647, %v1775_v8  ;;  %v860_v18 = vand.u32 2147483647, %v2597_v63  ;;  %v700_v15 = vsub.f32 2.0, %v684_v0  ;;  %v795_v51 = vmax.f32 %v1775_v8, 0.0 }
 0x1db   : > { %v2602_v22 = vpop.eup %1936  ;;  %v591_v20 = vmul.f32 1.442695, %v541_v12  ;;  %v593_v2 = vmul.f32 1.442695, %v542_v13 }
 0x1dc   : > { %v2604_v3 = vpop.eup %1938  ;;  %v716_v24 = vmul.f32 %v1935_v4, %v700_v15  ;;  %v891_v26 = vadd.f32 1e-12, %v859_v14  ;;  %v892_v27 = vadd.f32 1e-12, %v860_v18  ;;  %v827_v14 = vmul.f32 %v795_v51, %v731_v62 }
 0x1dd   : > { %1942 = vpow2.f32 %v591_v20  ;;  %v643_v29 = vadd.f32 %v2604_v3, %v2602_v22 }
 0x1de   : > { %v2609_v21 = vmul.f32 %v2498_v28, %v716_v24  ;;  %v2612_v23 = vmul.f32 %v2502_v32, %v716_v24  ;;  %1944 = vpow2.f32 %v593_v2 }
 0x1df   : > { %v1941_v31 = vpop.eup %1940  ;;  %644 = vadd.xlane.f32.xlu2 %v643_v29  ;;  %1946 = vrcp.f32 %v891_v26 }
 0x1e0   : > { %v2615_v6 = vadd.f32 -0.0025, %v2609_v21  ;;  %v2618_v38 = vadd.f32 -0.0025, %v2612_v23  ;;  %v685_v42 = vmul.f32 %v1941_v31, %v627_v11  ;;  %v630_v44 = vpop.xlane.xlu1 %629  ;;  %v507_v46 = vpop.xlane.xlu2 %506  ;;  %1948 = vrcp.f32 %v892_v27 }
 0x1e1   : > { %1950 = vrcp.f32 %v630_v44  ;;  %v543_v28 = vsub.f32 %v2506_v34, %v507_v46  ;;  %v544_v32 = vsub.f32 %v2508_v35, %v507_v46  ;;  %v796_v35 = vmax.f32 %v2597_v63, 0.0 }
 0x1e2   : > { %v861_v48 = vand.u32 2147483647, %v2615_v6  ;;  %v701_v49 = vsub.f32 2.0, %v685_v42  ;;  %v862_v53 = vand.u32 2147483647, %v2618_v38 }
 0x1e3   : > { %v2623_v52 = vpop.eup %1942  ;;  %v595_v55 = vmul.f32 1.442695, %v543_v28  ;;  %v597_v56 = vmul.f32 1.442695, %v544_v32  ;;  %v828_v42 = vmul.f32 %v796_v35, %v2594_v1 }
 0x1e4   : > { %v2626_v57 = vpop.eup %1944  ;;  %v717_v58 = vmul.f32 %v1941_v31, %v701_v49  ;;  %v893_v4 = vadd.f32 1e-12, %v861_v48  ;;  %v894_v15 = vadd.f32 1e-12, %v862_v53 }
 0x1e5   : > { %v1947_v0 = vpop.eup %1946  ;;  %1952 = vpow2.f32 %v595_v55  ;;  %v646_v34 = vadd.f32 %v2626_v57, %v2623_v52 }
 0x1e6   : > { %v1949_v11 = vpop.eup %1948  ;;  %v2632_v8 = vmul.f32 %v2512_v39, %v717_v58  ;;  %v2635_v9 = vmul.f32 %v2516_v43, %v717_v58  ;;  %1954 = vpow2.f32 %v597_v56  ;;  %v955_v12 = vmul.f32 %v1947_v0, %v891_v26 }
 0x1e7   : > { %v1951_v13 = vpop.eup %1950  ;;  %647 = vadd.xlane.f32.xlu1 %v646_v34  ;;  %v956_v18 = vmul.f32 %v1949_v11, %v892_v27  ;;  %1956 = vrcp.f32 %v893_v4  ;;  %v797_v56 = vmax.f32 %v2615_v6, 0.0 }
 0x1e8   : > { %v2638_v20 = vadd.f32 -0.0025, %v2632_v8  ;;  %v2641_v63 = vadd.f32 -0.0025, %v2635_v9  ;;  %v686_v2 = vmul.f32 %v1951_v13, %v630_v44  ;;  %v633_v39 = vpop.xlane.xlu0 %632  ;;  %v510_v24 = vpop.xlane.xlu1 %509  ;;  %v987_v29 = vsub.f32 2.0, %v955_v12 }
 0x1e9   : > { %1958 = vrcp.f32 %v633_v39  ;;  %v545_v43 = vsub.f32 %v2520_v45, %v510_v24  ;;  %v546_v26 = vsub.f32 %v2522_v47, %v510_v24  ;;  %v988_v31 = vsub.f32 2.0, %v956_v18 }
 0x1ea   : > { %v863_v62 = vand.u32 2147483647, %v2638_v20  ;;  %v702_v27 = vsub.f32 2.0, %v686_v2  ;;  %v1019_v46 = vmul.f32 %v1947_v0, %v987_v29  ;;  %1960 = vrcp.f32 %v894_v15 }
 0x1eb   : > { %v2647_v28 = vpop.eup %1952  ;;  %v599_v32 = vmul.f32 1.442695, %v545_v43  ;;  %v601_v48 = vmul.f32 1.442695, %v546_v26  ;;  %v1020_v44 = vmul.f32 %v1949_v11, %v988_v31  ;;  %v864_v51 = vand.u32 2147483647, %v2641_v63 }
 0x1ec   : > { %v2649_v49 = vpop.eup %1954  ;;  %v718_v45 = vmul.f32 %v1951_v13, %v702_v27  ;;  %v2652_v53 = vmul.f32 %v1019_v46, %v827_v14  ;;  %v798_v12 = vmax.f32 %v2618_v38, 0.0  ;;  %v895_v13 = vadd.f32 1e-12, %v863_v62 }
 0x1ed   : > { %v1957_v47 = vpop.eup %1956  ;;  %1962 = vpow2.f32 %v599_v32  ;;  %v649_v55 = vadd.f32 %v2649_v49, %v2647_v28  ;;  %v2656_v1 = vmul.f32 %v1020_v44, %v828_v42  ;;  %v896_v24 = vadd.f32 1e-12, %v864_v51 }
 0x1ee   : > { %v2660_v58 = vmul.f32 %v2526_v50, %v718_v45  ;;  %v2663_v0 = vmul.f32 %v2530_v54, %v718_v45  ;;  %1964 = vpow2.f32 %v601_v48  ;;  %v957_v34 = vmul.f32 %v1957_v47, %v893_v4 }
 0x1ef   : > { %v1959_v35 = vpop.eup %1958  ;;  %650 = vadd.xlane.f32.xlu0 %v649_v55  ;;  %v1083_v11 = vadd.f32 %v2656_v1, %v2652_v53  ;;  %v829_v26 = vmul.f32 %v797_v56, %v2609_v21  ;;  %v830_v21 = vmul.f32 %v798_v12, %v2612_v23 }
 0x1f0   : > { %v2669_v14 = vadd.f32 -0.0025, %v2660_v58  ;;  %v687_v6 = vmul.f32 %v1959_v35, %v633_v39  ;;  %v636_v18 = vpop.xlane.xlu2 %635  ;;  %v513_v50 = vpop.xlane.xlu0 %512  ;;  %v989_v2 = vsub.f32 2.0, %v957_v34  ;;  %v2672_v29 = vadd.f32 -0.0025, %v2663_v0 }
 0x1f1   : > { %v1961_v54 = vpop.eup %1960  ;;  %1084 = vadd.xlane.f32.xlu2 %v1083_v11  ;;  %1966 = vrcp.f32 %v636_v18  ;;  %v547_v4 = vsub.f32 %v2536_v59, %v513_v50  ;;  %v548_v43 = vsub.f32 %v2538_v60, %v513_v50 }
 0x1f2   : > { %v703_v38 = vsub.f32 2.0, %v687_v6  ;;  %v958_v31 = vmul.f32 %v1961_v54, %v894_v15  ;;  %v1021_v42 = vmul.f32 %v1957_v47, %v989_v2  ;;  %1968 = vrcp.f32 %v895_v13 }
 0x1f3   : > { %v2677_v62 = vpop.eup %1962  ;;  %v603_v39 = vmul.f32 1.442695, %v547_v4  ;;  %v605_v27 = vmul.f32 1.442695, %v548_v43  ;;  %v865_v32 = vand.u32 2147483647, %v2669_v14  ;;  %1970 = vrcp.f32 %v896_v24 }
 0x1f4   : > { %v2679_v46 = vpop.eup %1964  ;;  %v719_v48 = vmul.f32 %v1959_v35, %v703_v38  ;;  %v990_v44 = vsub.f32 2.0, %v958_v31  ;;  %v866_v59 = vand.u32 2147483647, %v2672_v29  ;;  %v799_v15 = vmax.f32 %v2638_v20, 0.0 }
 0x1f5   : > { %v652_v60 = vadd.f32 %v2679_v46, %v2677_v62  ;;  %1972 = vpow2.f32 %v603_v39  ;;  %v2690_v47 = vmul.f32 %v1021_v42, %v829_v26  ;;  %v897_v12 = vadd.f32 1e-12, %v865_v32 }
 0x1f6   : > { %v2688_v51 = vmul.f32 %v2540_v61, %v719_v48  ;;  %v1022_v45 = vmul.f32 %v1961_v54, %v990_v44  ;;  %v2693_v56 = vmul.f32 %v2544_v7, %v719_v48  ;;  %1974 = vpow2.f32 %v605_v27 }
 0x1f7   : > { %v1967_v55 = vpop.eup %1966  ;;  %v800_v7 = vmax.f32 %v2641_v63, 0.0  ;;  %v898_v43 = vadd.f32 1e-12, %v866_v59  ;;  %v801_v44 = vmax.f32 %v2669_v14, 0.0 }
 0x1f8   : > { %v2696_v34 = vadd.f32 -0.0025, %v2688_v51  ;;  %v688_v35 = vmul.f32 %v1967_v55, %v636_v18  ;;  %v2698_v11 = vmul.f32 %v1022_v45, %v830_v21  ;;  %v639_v23 = vpop.xlane.xlu1 %638  ;;  %v516_v20 = vpop.xlane.xlu2 %515  ;;  %v831_v18 = vmul.f32 %v799_v15, %v2632_v8 }
 0x1f9   : > { %v1969_v61 = vpop.eup %1968  ;;  %653 = vadd.xlane.f32.xlu2 %v652_v60  ;;  %1976 = vrcp.f32 %v639_v23  ;;  %v549_v6 = vsub.f32 %v2556_v17, %v516_v20  ;;  %v550_v50 = vsub.f32 %v2558_v19, %v516_v20  ;;  %v2707_v38 = vadd.f32 -0.0025, %v2693_v56 }
 0x1fa   : > { %v1971_v2 = vpop.eup %1970  ;;  %v704_v54 = vsub.f32 2.0, %v688_v35  ;;  %v1086_v4 = vadd.f32 %v2698_v11, %v2690_v47  ;;  %v959_v31 = vmul.f32 %v1969_v61, %v895_v13  ;;  %v867_v17 = vand.u32 2147483647, %v2696_v34 }
 0x1fb   : > { %v607_v26 = vmul.f32 1.442695, %v549_v6  ;;  %v960_v39 = vmul.f32 %v1971_v2, %v896_v24  ;;  %v2709_v27 = vpop.eup %1972  ;;  %v609_v63 = vmul.f32 1.442695, %v550_v50  ;;  %1978 = vrcp.f32 %v897_v12 }
 0x1fc   : > { %v720_v19 = vmul.f32 %v1967_v55, %v704_v54  ;;  %1087 = vadd.xlane.f32.xlu1 %v1086_v4  ;;  %v2712_v42 = vpop.eup %1974  ;;  %v832_v32 = vmul.f32 %v800_v7, %v2635_v9  ;;  %v991_v8 = vsub.f32 2.0, %v959_v31  ;;  %v802_v24 = vmax.f32 %v2672_v29, 0.0 }
 0x1fd   : > { %v992_v48 = vsub.f32 2.0, %v960_v39  ;;  %1980 = vpow2.f32 %v607_v26  ;;  %v868_v21 = vand.u32 2147483647, %v2707_v38  ;;  %v655_v14 = vadd.f32 %v2712_v42, %v2709_v27 }
 0x1fe   : > { %v2717_v59 = vmul.f32 %v2550_v10, %v720_v19  ;;  %v2720_v13 = vmul.f32 %v2554_v16, %v720_v19  ;;  %v1023_v15 = vmul.f32 %v1969_v61, %v991_v8  ;;  %1982 = vrcp.f32 %v898_v43 }
 0x1ff   : > { %v1977_v60 = vpop.eup %1976  ;;  %v1024_v45 = vmul.f32 %v1971_v2, %v992_v48  ;;  %1984 = vpow2.f32 %v609_v63  ;;  %v899_v35 = vadd.f32 1e-12, %v867_v17  ;;  %v900_v4 = vadd.f32 1e-12, %v868_v21 }
 0x200   : > { %v689_v9 = vmul.f32 %v1977_v60, %v639_v23  ;;  %v642_v55 = vpop.xlane.xlu0 %641  ;;  %v519_v10 = vpop.xlane.xlu1 %518  ;;  %v2727_v16 = vadd.f32 -0.0025, %v2717_v59  ;;  %v2729_v20 = vmul.f32 %v1023_v15, %v831_v18  ;;  %v2734_v61 = vadd.f32 -0.0025, %v2720_v13 }
 0x201   : > { %v2731_v29 = vmul.f32 %v1024_v45, %v832_v32  ;;  %1986 = vrcp.f32 %v642_v55  ;;  %v1979_v6 = vpop.eup %1978  ;;  %v551_v50 = vsub.f32 %v2572_v33, %v519_v10  ;;  %v552_v2 = vsub.f32 %v2574_v36, %v519_v10 }
 0x202   : > { %v705_v23 = vsub.f32 2.0, %v689_v9  ;;  %v961_v54 = vmul.f32 %v1979_v6, %v897_v12  ;;  %1988 = vrcp.f32 %v899_v35  ;;  %v869_v39 = vand.u32 2147483647, %v2727_v16 }
 0x203   : > { %v1089_v7 = vadd.f32 %v2731_v29, %v2729_v20  ;;  %v2740_v26 = vpop.eup %1980  ;;  %v833_v17 = vmul.f32 %v801_v44, %v2660_v58  ;;  %v834_v33 = vmul.f32 %v802_v24, %v2663_v0  ;;  %v611_v32 = vmul.f32 1.442695, %v551_v50 }
 0x204   : > { %v721_v18 = vmul.f32 %v1977_v60, %v705_v23  ;;  %656 = vadd.xlane.f32.xlu1 %v655_v14  ;;  %v1983_v31 = vpop.eup %1982  ;;  %v993_v19 = vsub.f32 2.0, %v961_v54  ;;  %v870_v60 = vand.u32 2147483647, %v2734_v61  ;;  %v613_v21 = vmul.f32 1.442695, %v552_v2 }
 0x205   : > { %1090 = vadd.xlane.f32.xlu0 %v1089_v7  ;;  %v2745_v63 = vpop.eup %1984  ;;  %v962_v8 = vmul.f32 %v1983_v31, %v898_v43  ;;  %1990 = vrcp.f32 %v900_v4  ;;  %v901_v9 = vadd.f32 1e-12, %v869_v39 }
 0x206   : > { %v2748_v36 = vmul.f32 %v2564_v25, %v721_v18  ;;  %v2751_v12 = vmul.f32 %v2568_v30, %v721_v18  ;;  %v1025_v15 = vmul.f32 %v1979_v6, %v993_v19  ;;  %v803_v25 = vmax.f32 %v2696_v34, 0.0 }
 0x207   : > { %v1987_v48 = vpop.eup %1986  ;;  %v994_v44 = vsub.f32 2.0, %v962_v8  ;;  %v658_v30 = vadd.f32 %v2745_v63, %v2740_v26  ;;  %1992 = vpow2.f32 %v611_v32  ;;  %v902_v34 = vadd.f32 1e-12, %v870_v60 }
 0x208   : > { %v2755_v58 = vadd.f32 -0.0025, %v2748_v36  ;;  %v690_v0 = vmul.f32 %v1987_v48, %v642_v55  ;;  %v522_v24 = vpop.xlane.xlu0 %521  ;;  %v2759_v45 = vadd.f32 -0.0025, %v2751_v12  ;;  %v1989_v14 = vpop.eup %1988  ;;  %v2764_v23 = vmul.f32 %v1025_v15, %v833_v17 }
 0x209   : > { %v553_v43 = vsub.f32 %v2584_v40, %v522_v24  ;;  %v1026_v6 = vmul.f32 %v1983_v31, %v994_v44  ;;  %1994 = vpow2.f32 %v613_v21  ;;  %v554_v55 = vsub.f32 %v2586_v41, %v522_v24 }
 0x20a   : > { %v706_v10 = vsub.f32 2.0, %v690_v0  ;;  %v963_v50 = vmul.f32 %v1989_v14, %v899_v35  ;;  %v871_v7 = vand.u32 2147483647, %v2755_v58  ;;  %1996 = vrcp.f32 %v901_v9 }
 0x20b   : > { %v2768_v54 = vmul.f32 %v1026_v6, %v834_v33  ;;  %v1991_v18 = vpop.eup %1990  ;;  %v872_v40 = vand.u32 2147483647, %v2759_v45  ;;  %v615_v39 = vmul.f32 1.442695, %v553_v43  ;;  %v804_v31 = vmax.f32 %v2707_v38, 0.0 }
 0x20c   : > { %v722_v2 = vmul.f32 %v1987_v48, %v706_v10  ;;  %v995_v17 = vsub.f32 2.0, %v963_v50  ;;  %v617_v33 = vmul.f32 1.442695, %v554_v55  ;;  %v964_v32 = vmul.f32 %v1991_v18, %v900_v4 }
 0x20d   : > { %659 = vadd.xlane.f32.xlu0 %v658_v30  ;;  %v1092_v35 = vadd.f32 %v2768_v54, %v2764_v23  ;;  %1998 = vrcp.f32 %v902_v34  ;;  %v2780_v48 = vpop.eup %1992  ;;  %v836_v15 = vmul.f32 %v804_v31, %v2693_v56  ;;  %v904_v0 = vadd.f32 1e-12, %v872_v40 }
 0x20e   : > { %v2773_v19 = vmul.f32 %v2576_v5, %v722_v2  ;;  %v2776_v41 = vmul.f32 %v2580_v37, %v722_v2  ;;  %v1027_v8 = vmul.f32 %v1989_v14, %v995_v17  ;;  %v835_v5 = vmul.f32 %v803_v25, %v2688_v51 }
 0x20f   : > { %1093 = vadd.xlane.f32.xlu2 %v1092_v35  ;;  %v903_v37 = vadd.f32 1e-12, %v871_v7  ;;  %v2789_v21 = vpop.eup %1994  ;;  %2000 = vpow2.f32 %v615_v39  ;;  %v996_v4 = vsub.f32 2.0, %v964_v32  ;;  %v805_v43 = vmax.f32 %v2727_v16, 0.0 }
 0x210   : > { %v2783_v60 = vadd.f32 -0.0025, %v2773_v19  ;;  %v2786_v38 = vadd.f32 -0.0025, %v2776_v41  ;;  %v1997_v44 = vpop.eup %1996  ;;  %v2795_v10 = vmul.f32 %v1027_v8, %v835_v5  ;;  %v661_v25 = vadd.f32 %v2789_v21, %v2780_v48 }
 0x211   : > { %2002 = vrcp.f32 %v903_v37  ;;  %v1028_v14 = vmul.f32 %v1991_v18, %v996_v4  ;;  %v965_v51 = vmul.f32 %v1997_v44, %v901_v9  ;;  %v806_v2 = vmax.f32 %v2734_v61, 0.0 }
 0x212   : > { %v873_v24 = vand.u32 2147483647, %v2783_v60  ;;  %v874_v30 = vand.u32 2147483647, %v2786_v38  ;;  %2004 = vrcp.f32 %v904_v0  ;;  %v837_v31 = vmul.f32 %v805_v43, %v2717_v59 }
 0x213   : > { %2006 = vpow2.f32 %v617_v33  ;;  %v1999_v55 = vpop.eup %1998  ;;  %v2799_v50 = vmul.f32 %v1028_v14, %v836_v15  ;;  %v997_v7 = vsub.f32 2.0, %v965_v51  ;;  %v807_v35 = vmax.f32 %v2755_v58, 0.0 }
 0x214   : > { %v905_v56 = vadd.f32 1e-12, %v873_v24  ;;  %v906_v6 = vadd.f32 1e-12, %v874_v30  ;;  %v966_v40 = vmul.f32 %v1999_v55, %v902_v34  ;;  %v808_v33 = vmax.f32 %v2759_v45, 0.0 }
 0x215   : > { %v2802_v16 = vpop.eup %2000  ;;  %v1095_v9 = vadd.f32 %v2799_v50, %v2795_v10  ;;  %v1029_v18 = vmul.f32 %v1997_v44, %v997_v7  ;;  %v838_v8 = vmul.f32 %v806_v2, %v2720_v13  ;;  %v839_v59 = vmul.f32 %v807_v35, %v2748_v36  ;;  %v312_v35 = vld [vmem:[#allocation5 + $0xf8] sm:$0xff] }
 0x216   : > { %2008 = vrcp.f32 %v905_v56  ;;  %v998_v17 = vsub.f32 2.0, %v966_v40  ;;  %v840_v58 = vmul.f32 %v808_v33, %v2751_v12  ;;  %v809_v13 = vmax.f32 %v2783_v60, 0.0  ;;  %1484 = vmatpush.msra.mxu3 %v312_v35  ;;  %v311_v33 = vld [vmem:[#allocation5 + $0xf0] sm:$0xff] }
 0x217   : > { %2010 = vrcp.f32 %v906_v6  ;;  %v2003_v39 = vpop.eup %2002  ;;  %662 = vadd.xlane.f32.xlu2 %v661_v25  ;;  %1096 = vadd.xlane.f32.xlu1 %v1095_v9  ;;  %v2812_v15 = vmul.f32 %v1029_v18, %v837_v31 }
 0x218   : > { %v2005_v32 = vpop.eup %2004  ;;  %v967_v61 = vmul.f32 %v2003_v39, %v903_v37  ;;  %v1030_v5 = vmul.f32 %v1999_v55, %v998_v17  ;;  %v810_v55 = vmax.f32 %v2786_v38, 0.0  ;;  %v841_v9 = vmul.f32 %v809_v13, %v2773_v19  ;;  %v296_v17 = vld [vmem:[#allocation5 + $0x78] sm:$0xff]  ;;  %v295_v19 = vld [vmem:[#allocation5 + $0x70] sm:$0xff]  ;;  %1485 = vmatpush.msra.mxu3 %v311_v33  ;;  %v298_v33 = vld [vmem:[#allocation5 + $0x88] sm:$0xff] }
 0x219   : > { %v2809_v34 = vpop.eup %2006  ;;  %v968_v4 = vmul.f32 %v2005_v32, %v904_v0  ;;  %1419 = vmatpush.msra.mxu2 %v296_v17  ;;  %v304_v13 = vld [vmem:[#allocation5 + $0xb8] sm:$0xff]  ;;  %v299_v17 = vld [vmem:[#allocation5 + $0x90] sm:$0xff] }
 0x21a   : > { %v999_v44 = vsub.f32 2.0, %v967_v61  ;;  %v2814_v30 = vmul.f32 %v1030_v5, %v838_v8  ;;  %v664_v37 = vadd.f32 %v2809_v34, %v2802_v16  ;;  %v293_v61 = vld [vmem:[#allocation5 + $0x60] sm:$0xff]  ;;  %v292_v5 = vld [vmem:[#allocation5 + $0x58] sm:$0xff] }
 0x21b   : > { %v1000_v45 = vsub.f32 2.0, %v968_v4  ;;  %1420 = vmatpush.msra.mxu2 %v295_v19  ;;  %v309_v8 = vld [vmem:[#allocation5 + $0xe0] sm:$0xff]  ;;  %v308_v4 = vld [vmem:[#allocation5 + $0xd8] sm:$0xff]  ;;  %v282_v19 = vld [vmem:[#allocation5 + $0x8] sm:$0xff] }
 0x21c   : > { %v2009_v24 = vpop.eup %2008  ;;  %v1031_v14 = vmul.f32 %v2003_v39, %v999_v44  ;;  %v1098_v0 = vadd.f32 %v2814_v30, %v2812_v15  ;;  %v291_v44 = vld [vmem:[#allocation5 + $0x50] sm:$0xff] }
 0x21d   : > { %v2011_v43 = vpop.eup %2010  ;;  %v969_v51 = vmul.f32 %v2009_v24, %v905_v56  ;;  %v1032_v25 = vmul.f32 %v2005_v32, %v1000_v45  ;;  %v842_v56 = vmul.f32 %v810_v55, %v2776_v41  ;;  %v294_v32 = vld [vmem:[#allocation5 + $0x68] sm:$0xff]  ;;  %v289_v45 = vld [vmem:[#allocation5 + $0x40] sm:$0xff] }
 0x21e   : > { %v970_v7 = vmul.f32 %v2011_v43, %v906_v6  ;;  %v2824_v2 = vmul.f32 %v1031_v14, %v839_v59  ;;  %1099 = vadd.xlane.f32.xlu0 %v1098_v0  ;;  %v310_v41 = vld [vmem:[#allocation5 + $0xe8] sm:$0xff]  ;;  %1421 = vmatpush.msra.mxu2 %v294_v32  ;;  %v288_v14 = vld [vmem:[#allocation5 + $0x38] sm:$0xff]  ;;  %v303_v0 = vld [vmem:[#allocation5 + $0xb0] sm:$0xff] }
 0x21f   : > { %v1001_v36 = vsub.f32 2.0, %v969_v51  ;;  %v2826_v12 = vmul.f32 %v1032_v25, %v840_v58  ;;  %665 = vadd.xlane.f32.xlu1 %v664_v37  ;;  %1486 = vmatpush.msra.mxu3 %v310_v41  ;;  %v290_v59 = vld [vmem:[#allocation5 + $0x48] sm:$0xff]  ;;  %v287_v51 = vld [vmem:[#allocation5 + $0x30] sm:$0xff] }
 0x220   : > { %v1002_v40 = vsub.f32 2.0, %v970_v7  ;;  %1422 = vmatpush.msra.mxu2 %v293_v61  ;;  %v306_v58 = vld [vmem:[#allocation5 + $0xc8] sm:$0xff]  ;;  %v285_v7 = vld [vmem:[#allocation5 + $0x20] sm:$0xff] }
 0x221   : > { %v1033_v18 = vmul.f32 %v2009_v24, %v1001_v36  ;;  %v1101_v60 = vadd.f32 %v2826_v12, %v2824_v2  ;;  %1487 = vmatpush.msra.mxu3 %v309_v8  ;;  %v307_v24 = vld [vmem:[#allocation5 + $0xd0] sm:$0xff]  ;;  %v286_v25 = vld [vmem:[#allocation5 + $0x28] sm:$0xff]  ;;  %v301_v36 = vld [vmem:[#allocation5 + $0xa0] sm:$0xff] }
 0x222   : > { %v1034_v39 = vmul.f32 %v2011_v43, %v1002_v40  ;;  %1423 = vmatpush.msra.mxu2 %v292_v5  ;;  %v305_v43 = vld [vmem:[#allocation5 + $0xc0] sm:$0xff]  ;;  %v302_v55 = vld [vmem:[#allocation5 + $0xa8] sm:$0xff] }
 0x223   : > { %v2832_v31 = vmul.f32 %v1033_v18, %v841_v9  ;;  %1102 = vadd.xlane.f32.xlu2 %v1101_v60  ;;  %1488 = vmatpush.msra.mxu3 %v308_v4  ;;  %v284_v60 = vld [vmem:[#allocation5 + $0x18] sm:$0xff]  ;;  %v281_v61 = vld [vmem:[#allocation5] sm:$0xff] }
 0x224   : > { %v2834_v38 = vmul.f32 %v1034_v39, %v842_v56  ;;  %1424 = vmatpush.msra.mxu2 %v291_v44  ;;  %v300_v56 = vld [vmem:[#allocation5 + $0x98] sm:$0xff]  ;;  %v297_v8 = vld [vmem:[#allocation5 + $0x80] sm:$0xff] }
 0x225   : > { %1489 = vmatpush.msra.mxu3 %v307_v24 }
 0x226   : > { %v1104_v6 = vadd.f32 %v2834_v38, %v2832_v31  ;;  %1425 = vmatpush.msra.mxu2 %v290_v59 }
 0x227   : > { %1490 = vmatpush.msra.mxu3 %v306_v58 }
 0x228   : > { %1105 = vadd.xlane.f32.xlu0 %v1104_v6  ;;  %1426 = vmatpush.msra.mxu2 %v289_v45  ;;  %v283_v6 = vld [vmem:[#allocation5 + $0x10] sm:$0xff] }
 0x229   : > { %1491 = vmatpush.msra.mxu3 %v305_v43 }
 0x22a   : > { %1427 = vmatpush.msra.mxu2 %v288_v14 }
 0x22b   : > { %1492 = vmatpush.msra.mxu3 %v304_v13 }
 0x22c   : > { %1428 = vmatpush.msra.mxu2 %v287_v51 }
 0x22d   : > { %1493 = vmatpush.msra.mxu3 %v303_v0 }
 0x22e   : > { %1429 = vmatpush.msra.mxu2 %v286_v25 }
 0x22f   : > { %1494 = vmatpush.msra.mxu3 %v302_v55 }
 0x230   : > { %1430 = vmatpush.msra.mxu2 %v285_v7 }
 0x231   : > { %1495 = vmatpush.msra.mxu3 %v301_v36 }
 0x232   : > { %1431 = vmatpush.msra.mxu2 %v284_v60 }
 0x233   : > { %1496 = vmatpush.msra.mxu3 %v300_v56 }
 0x234   : > { %1432 = vmatpush.msra.mxu2 %v283_v6 }
 0x235   : > { %1497 = vmatpush.msra.mxu3 %v299_v17 }
 0x236   : > { %1433 = vmatpush.msra.mxu2 %v282_v19 }
 0x237   : > { %1498 = vmatpush.msra.mxu3 %v298_v33 }
 0x238   : > { %1434 = vmatpush.msra.mxu2 %v281_v61 }
 0x239   : > { %1499 = vmatpush.msra.mxu3 %v297_v8 }
 0x252   : > { %v645_v37 = vpop.xlane.xlu2 %644 }
 0x253   : > { %2012 = vrcp.f32 %v645_v37 }
 0x259   : > { %v2013_v40 = vpop.eup %2012 }
 0x25a   : > { %v691_v9 = vmul.f32 %v2013_v40, %v645_v37  ;;  %v648_v18 = vpop.xlane.xlu1 %647 }
 0x25b   : > { %2014 = vrcp.f32 %v648_v18 }
 0x25c   : > { %v707_v39 = vsub.f32 2.0, %v691_v9 }
 0x25e   : > { %v723_v35 = vmul.f32 %v2013_v40, %v707_v39 }
 0x260   : > { %v747_v32 = vmul.f32 %v2602_v22, %v723_v35  ;;  %v2840_v41 = vmul.f32 %v2604_v3, %v723_v35 }
 0x261   : > { %v2015_v5 = vpop.eup %2014 }
 0x262   : > { %v1791_v4 = vadd.f32 -0.0025, %v747_v32  ;;  %v1792_v44 = vadd.f32 -0.0025, %v2840_v41  ;;  %v692_v24 = vmul.f32 %v2015_v5, %v648_v18  ;;  %v651_v59 = vpop.xlane.xlu0 %650 }
 0x263   : > { %2016 = vrcp.f32 %v651_v59 }
 0x264   : > { %v875_v58 = vand.u32 2147483647, %v1791_v4  ;;  %v876_v45 = vand.u32 2147483647, %v1792_v44  ;;  %v708_v43 = vsub.f32 2.0, %v692_v24  ;;  %v1085_v37 = vpop.xlane.xlu2 %1084  ;;  %v811_v40 = vmax.f32 %v1791_v4, 0.0 }
 0x265   : > { %v1131_v14 = vmax.f32 %v1085_v37, 1e-12  ;;  %v812_v6 = vmax.f32 %v1792_v44, 0.0 }
 0x266   : > { %v724_v22 = vmul.f32 %v2015_v5, %v708_v43  ;;  %v907_v13 = vadd.f32 1e-12, %v875_v58  ;;  %v908_v3 = vadd.f32 1e-12, %v876_v45  ;;  %v843_v33 = vmul.f32 %v811_v40, %v747_v32 }
 0x267   : > { %2018 = vrcp.f32 %v1131_v14  ;;  %v1158_v8 = vand.u32 2147483648, %v1131_v14  ;;  %vm1152_vm1 = vweird.f32 %v1131_v14 }
 0x268   : > { %v749_v51 = vmul.f32 %v2623_v52, %v724_v22  ;;  %v750_v0 = vmul.f32 %v2626_v57, %v724_v22  ;;  %2020 = vrcp.f32 %v907_v13  ;;  %v1156_v52 = vand.u32 2147483647, %v1131_v14 }
 0x269   : > { %v2017_v25 = vpop.eup %2016  ;;  %2022 = vrcp.f32 %v908_v3 }
 0x26a   : > { %v1793_v55 = vadd.f32 -0.0025, %v749_v51  ;;  %v1794_v7 = vadd.f32 -0.0025, %v750_v0  ;;  %v693_v36 = vmul.f32 %v2017_v25, %v651_v59  ;;  %vm1157_vm3 = vcmp.eq.f32.partialorder %v1156_v52, 8.507059e+37 }
 0x26c   : > { %v877_v9 = vand.u32 2147483647, %v1793_v55  ;;  %v878_v18 = vand.u32 2147483647, %v1794_v7  ;;  %v709_v60 = vsub.f32 2.0, %v693_v36  ;;  %v654_v56 = vpop.xlane.xlu2 %653  ;;  %v813_v43 = vmax.f32 %v1793_v55, 0.0 }
 0x26d   : > { %v2019_v39 = vpop.eup %2018  ;;  %2024 = vrcp.f32 %v654_v56  ;;  %v814_v22 = vmax.f32 %v1794_v7, 0.0  ;;  %v844_v55 = vmul.f32 %v812_v6, %v2840_v41 }
 0x26e   : > { %v2021_v17 = vpop.eup %2020  ;;  %v725_v35 = vmul.f32 %v2017_v25, %v709_v60  ;;  %v1148_v19 = vmul.f32 %v2019_v39, %v1131_v14  ;;  %v909_v24 = vadd.f32 1e-12, %v877_v9  ;;  %v910_v58 = vadd.f32 1e-12, %v878_v18 }
 0x26f   : > { %v2023_v57 = vpop.eup %2022  ;;  %v1088_v61 = vpop.xlane.xlu1 %1087  ;;  %v971_v5 = vmul.f32 %v2021_v17, %v907_v13  ;;  %vm1153_vm0 = vweird.f32 %v2019_v39  ;;  %v846_v41 = vmul.f32 %v814_v22, %v750_v0 }
 0x270   : > { %v2846_v4 = vmul.f32 %v2647_v28, %v725_v35  ;;  %v2848_v59 = vmax.f32 %v1088_v61, 1e-12  ;;  %v1149_v45 = vsub.f32 1.0, %v1148_v19  ;;  %v972_v44 = vmul.f32 %v2023_v57, %v908_v3  ;;  %vm1154_vm2 = vmor %vm1152_vm1, %vm1153_vm0 }
 0x271   : > { %v1003_v37 = vsub.f32 2.0, %v971_v5  ;;  %2026 = vrcp.f32 %v909_v24  ;;  %v2851_v32 = vmul.f32 %v2649_v49, %v725_v35  ;;  %v1159_v49 = vor.u32 1.1754944e-38, %v1158_v8 }
 0x272   : > { %2028 = vrcp.f32 %v2848_v59  ;;  %v1150_v13 = vmul.f32 %v2019_v39, %v1149_v45  ;;  %v2855_v28 = vadd.f32 -0.0025, %v2846_v4  ;;  %v1004_v36 = vsub.f32 2.0, %v972_v44 }
 0x273   : > { %v2025_v25 = vpop.eup %2024  ;;  %v1035_v40 = vmul.f32 %v2021_v17, %v1003_v37  ;;  %2030 = vrcp.f32 %v910_v58  ;;  %v2862_v60 = vadd.f32 -0.0025, %v2851_v32  ;;  %v845_v61 = vmul.f32 %v813_v43, %v749_v51 }
 0x274   : > { %v694_v9 = vmul.f32 %v2025_v25, %v654_v56  ;;  %v1151_v3 = vadd.f32 %v2019_v39, %v1150_v13  ;;  %v1036_v7 = vmul.f32 %v2023_v57, %v1004_v36  ;;  %v879_v56 = vand.u32 2147483647, %v2855_v28 }
 0x275   : > { %v2859_v18 = vmul.f32 %v1035_v40, %v843_v33  ;;  %v880_v13 = vand.u32 2147483647, %v2862_v60  ;;  %vm1167_vm4 = vweird.f32 %v2848_v59  ;;  %v1173_v22 = vand.u32 2147483648, %v2848_v59 }
 0x276   : > { %v710_v35 = vsub.f32 2.0, %v694_v9  ;;  %v1155_v19 = vsel %vm1154_vm2, %v2019_v39, %v1151_v3  ;;  %v2865_v14 = vmul.f32 %v1036_v7, %v844_v55  ;;  %v911_v55 = vadd.f32 1e-12, %v879_v56 }
 0x277   : > { %v2027_v17 = vpop.eup %2026  ;;  %v657_v5 = vpop.xlane.xlu1 %656  ;;  %v1160_v45 = vsel %vm1157_vm3, %v1159_v49, %v1155_v19  ;;  %v816_v19 = vmax.f32 %v2862_v60, 0.0  ;;  %v1174_v56 = vor.u32 1.1754944e-38, %v1173_v22 }
 0x278   : > { %v2029_v6 = vpop.eup %2028  ;;  %v726_v52 = vmul.f32 %v2025_v25, %v710_v35  ;;  %2032 = vrcp.f32 %v657_v5  ;;  %v1091_v33 = vpop.xlane.xlu0 %1090  ;;  %v1387_v57 = vmul.f32 %v1160_v45, %v2652_v53  ;;  %v1388_v8 = vmul.f32 %v1160_v45, %v2656_v1 }
 0x279   : > { %v2031_v44 = vpop.eup %2030  ;;  %v1163_v51 = vmul.f32 %v2029_v6, %v2848_v59  ;;  %v2870_v39 = vmax.f32 %v1091_v33, 1e-12  ;;  %v1107_v43 = vadd.f32 %v2865_v14, %v2859_v18  ;;  %v973_v37 = vmul.f32 %v2027_v17, %v909_v24 }
 0x27a   : > { %1435 = vmatmul.f32.vlgmr.msra.gmra.mxu2 %v1387_v57  ;;  %1565 = vst [vmem:[%s2877_s26] sm:$0xff] %v1387_v57  ;;  %1500 = vmatmul.f32.vlgmr.msra.gmra.mxu3 %v1388_v8  ;;  %v974_v53 = vmul.f32 %v2031_v44, %v910_v58  ;;  %v1171_v1 = vand.u32 2147483647, %v2848_v59  ;;  %v2886_v25 = vmul.f32 %v2677_v62, %v726_v52  ;;  %v815_v58 = vmax.f32 %v2855_v28, 0.0 }
 0x27b   : > { %2034 = vrcp.f32 %v2870_v39  ;;  %1566 = vst [vmem:[%s2877_s26 + $0x8] sm:$0xff] %v1388_v8  ;;  %1108 = vadd.xlane.f32.xlu1 %v1107_v43  ;;  %v1005_v0 = vsub.f32 2.0, %v973_v37  ;;  %v1164_v24 = vsub.f32 1.0, %v1163_v51  ;;  %v2889_v36 = vmul.f32 %v2679_v46, %v726_v52 }
 0x27c   : > { %v1006_v40 = vsub.f32 2.0, %v974_v53  ;;  %vm1168_vm5 = vweird.f32 %v2029_v6  ;;  %vm2892_vm6 = vcmp.eq.f32.partialorder %v1171_v1, 8.507059e+37  ;;  %v912_v62 = vadd.f32 1e-12, %v880_v13 }
 0x27d   : > { %v1037_v9 = vmul.f32 %v2027_v17, %v1005_v0  ;;  %v1165_v3 = vmul.f32 %v2029_v6, %v1164_v24  ;;  %2036 = vrcp.f32 %v911_v55  ;;  %v2900_v28 = vadd.f32 -0.0025, %v2886_v25  ;;  %vm1169_vm7 = vmor %vm1167_vm4, %vm1168_vm5 }
 0x27e   : > { %v2033_v49 = vpop.eup %2032  ;;  %v1038_v7 = vmul.f32 %v2031_v44, %v1006_v40  ;;  %2038 = vrcp.f32 %v912_v62  ;;  %v2907_v60 = vadd.f32 -0.0025, %v2889_v36  ;;  %v1186_v59 = vand.u32 2147483647, %v2870_v39 }
 0x27f   : > { %v695_v45 = vmul.f32 %v2033_v49, %v657_v5  ;;  %v2897_v33 = vmul.f32 %v1037_v9, %v845_v61  ;;  %v1166_v46 = vadd.f32 %v2029_v6, %v1165_v3  ;;  %v1188_v53 = vand.u32 2147483648, %v2870_v39 }
 0x280   : > { %v660_v17 = vpop.xlane.xlu0 %659  ;;  %v2902_v52 = vmul.f32 %v1038_v7, %v846_v41  ;;  %v847_v1 = vmul.f32 %v815_v58, %v2846_v4  ;;  %v848_v0 = vmul.f32 %v816_v19, %v2851_v32  ;;  %v881_v40 = vand.u32 2147483647, %v2900_v28 }
 0x281   : > { %v2035_v57 = vpop.eup %2034  ;;  %v711_v5 = vsub.f32 2.0, %v695_v45  ;;  %2040 = vrcp.f32 %v660_v17  ;;  %v1170_v61 = vsel %vm1169_vm7, %v2029_v6, %v1166_v46  ;;  %v882_v9 = vand.u32 2147483647, %v2907_v60 }
 0x282   : > { %v1178_v8 = vmul.f32 %v2035_v57, %v2870_v39  ;;  %v1110_v44 = vadd.f32 %v2902_v52, %v2897_v33  ;;  %v1175_v41 = vsel %vm2892_vm6, %v1174_v56, %v1170_v61  ;;  %v1094_v43 = vpop.xlane.xlu2 %1093  ;;  %vm1183_vm8 = vweird.f32 %v2035_v57 }
 0x283   : > { %v727_v51 = vmul.f32 %v2033_v49, %v711_v5  ;;  %v1389_v37 = vmul.f32 %v1175_v41, %v2690_v47  ;;  %v1390_v13 = vmul.f32 %v1175_v41, %v2698_v11  ;;  %v2918_v6 = vmax.f32 %v1094_v43, 1e-12  ;;  %v2037_v22 = vpop.eup %2036 }
 0x284   : > { %1111 = vadd.xlane.f32.xlu2 %v1110_v44  ;;  %v1179_v24 = vsub.f32 1.0, %v1178_v8  ;;  %v2039_v11 = vpop.eup %2038  ;;  %v975_v4 = vmul.f32 %v2037_v22, %v911_v55  ;;  %vm1182_vm9 = vweird.f32 %v2870_v39  ;;  %vm2934_vm10 = vcmp.eq.f32.partialorder %v1186_v59, 8.507059e+37 }
 0x285   : > { %v2925_v47 = vmul.f32 %v2709_v27, %v727_v51  ;;  %1438 = vmatmul.f32.gmra.mxu2 %v1389_v37  ;;  %1567 = vst [vmem:[%s2877_s26 + $0x10] sm:$0xff] %v1389_v37  ;;  %1503 = vmatmul.f32.gmra.mxu3 %v1390_v13  ;;  %v2929_v3 = vmul.f32 %v2712_v42, %v727_v51  ;;  %2042 = vrcp.f32 %v2918_v6  ;;  %v1189_v7 = vor.u32 1.1754944e-38, %v1188_v53  ;;  %vm1184_vm11 = vmor %vm1182_vm9, %vm1183_vm8 }
 0x286   : > { %1568 = vst [vmem:[%s2877_s26 + $0x18] sm:$0xff] %v1390_v13  ;;  %v1180_v32 = vmul.f32 %v2035_v57, %v1179_v24  ;;  %v976_v49 = vmul.f32 %v2039_v11, %v912_v62  ;;  %v1007_v19 = vsub.f32 2.0, %v975_v4  ;;  %v817_v42 = vmax.f32 %v2900_v28, 0.0 }
 0x287   : > { %v2041_v58 = vpop.eup %2040  ;;  %v2940_v46 = vadd.f32 -0.0025, %v2925_v47  ;;  %v818_v55 = vmax.f32 %v2907_v60, 0.0  ;;  %v2944_v62 = vadd.f32 1e-12, %v881_v40  ;;  %v1203_v59 = vand.u32 2147483648, %v2918_v6 }
 0x288   : > { %v696_v35 = vmul.f32 %v2041_v58, %v660_v17  ;;  %v1181_v45 = vadd.f32 %v2035_v57, %v1180_v32  ;;  %v1008_v56 = vsub.f32 2.0, %v976_v49  ;;  %v2947_v39 = vadd.f32 -0.0025, %v2929_v3 }
 0x289   : > { %v1039_v61 = vmul.f32 %v2037_v22, %v1007_v19  ;;  %v1201_v41 = vand.u32 2147483647, %v2918_v6  ;;  %vm1197_vm12 = vweird.f32 %v2918_v6  ;;  %v1204_v32 = vor.u32 1.1754944e-38, %v1203_v59 }
 0x28a   : > { %v712_v5 = vsub.f32 2.0, %v696_v35  ;;  %v1185_v17 = vsel %vm1184_vm11, %v2035_v57, %v1181_v45  ;;  %v663_v8 = vpop.xlane.xlu2 %662  ;;  %v1040_v44 = vmul.f32 %v2039_v11, %v1008_v56  ;;  %v1097_v43 = vpop.xlane.xlu1 %1096  ;;  %v849_v27 = vmul.f32 %v817_v42, %v2886_v25 }
 0x28b   : > { %v1190_v28 = vsel %vm2934_vm10, %v1189_v7, %v1185_v17  ;;  %v2043_v51 = vpop.eup %2042  ;;  %2044 = vrcp.f32 %v663_v8  ;;  %v2953_v37 = vmul.f32 %v1039_v61, %v847_v1  ;;  %v2957_v53 = vmax.f32 %v1097_v43, 1e-12 }
 0x28c   : > { %v728_v60 = vmul.f32 %v2041_v58, %v712_v5  ;;  %v1391_v13 = vmul.f32 %v1190_v28, %v2729_v20  ;;  %v1193_v57 = vmul.f32 %v2043_v51, %v2918_v6  ;;  %v2959_v24 = vmul.f32 %v1040_v44, %v848_v0 }
 0x28d   : > { %v1392_v22 = vmul.f32 %v1190_v28, %v2731_v29  ;;  %v914_v1 = vadd.f32 1e-12, %v882_v9  ;;  %v883_v20 = vand.u32 2147483647, %v2940_v46  ;;  %2046 = vrcp.f32 %v2957_v53 }
 0x28e   : > { %v2963_v40 = vmul.f32 %v2740_v26, %v728_v60  ;;  %v2966_v11 = vmul.f32 %v2745_v63, %v728_v60  ;;  %1441 = vmatmul.f32.gmra.mxu2 %v1391_v13  ;;  %1569 = vst [vmem:[%s2877_s26 + $0x20] sm:$0xff] %v1391_v13  ;;  %v1113_v0 = vadd.f32 %v2959_v24, %v2953_v37  ;;  %v1194_v29 = vsub.f32 1.0, %v1193_v57 }
 0x28f   : > { %1506 = vmatmul.f32.gmra.mxu3 %v1392_v22  ;;  %1570 = vst [vmem:[%s2877_s26 + $0x28] sm:$0xff] %v1392_v22  ;;  %v884_v26 = vand.u32 2147483647, %v2947_v39  ;;  %vm2979_vm13 = vcmp.eq.f32.partialorder %v1201_v41, 8.507059e+37  ;;  %2048 = vrcp.f32 %v2944_v62  ;;  %vm1198_vm14 = vweird.f32 %v2043_v51 }
 0x290   : > { %v2977_v63 = vadd.f32 -0.0025, %v2963_v40  ;;  %1114 = vadd.xlane.f32.xlu0 %v1113_v0  ;;  %v1195_v9 = vmul.f32 %v2043_v51, %v1194_v29  ;;  %2050 = vrcp.f32 %v914_v1  ;;  %v2985_v49 = vadd.f32 -0.0025, %v2966_v11  ;;  %vm1199_vm15 = vmor %vm1197_vm12, %vm1198_vm14 }
 0x291   : > { %v2045_v58 = vpop.eup %2044  ;;  %v2989_v7 = vmul.f32 %v818_v55, %v2889_v36  ;;  %v1216_v35 = vand.u32 2147483647, %v2957_v53  ;;  %v1100_v45 = vpop.xlane.xlu0 %1099  ;;  %v1218_v5 = vand.u32 2147483648, %v2957_v53  ;;  %v819_v61 = vmax.f32 %v2940_v46, 0.0 }
 0x292   : > { %v697_v19 = vmul.f32 %v2045_v58, %v663_v8  ;;  %v1196_v56 = vadd.f32 %v2043_v51, %v1195_v9  ;;  %v885_v17 = vand.u32 2147483647, %v2977_v63  ;;  %v666_v44 = vpop.xlane.xlu1 %665  ;;  %v2995_v28 = vmax.f32 %v1100_v45, 1e-12 }
 0x293   : > { %vm1212_vm0 = vweird.f32 %v2957_v53  ;;  %v915_v25 = vadd.f32 1e-12, %v883_v20  ;;  %v2047_v36 = vpop.eup %2046  ;;  %2052 = vrcp.f32 %v666_v44  ;;  %v916_v8 = vadd.f32 1e-12, %v884_v26 }
 0x294   : > { %v713_v42 = vsub.f32 2.0, %v697_v19  ;;  %v1200_v55 = vsel %vm1199_vm15, %v2043_v51, %v1196_v56  ;;  %v886_v46 = vand.u32 2147483647, %v2985_v49  ;;  %v1208_v59 = vmul.f32 %v2047_v36, %v2957_v53 }
 0x295   : > { %v2049_v41 = vpop.eup %2048  ;;  %2054 = vrcp.f32 %v2995_v28  ;;  %v1205_v6 = vsel %vm2979_vm13, %v1204_v32, %v1200_v55  ;;  %vm3015_vm1 = vcmp.eq.f32.partialorder %v1216_v35, 8.507059e+37  ;;  %vm1213_vm2 = vweird.f32 %v2047_v36 }
 0x296   : > { %v2051_v60 = vpop.eup %2050  ;;  %v729_v43 = vmul.f32 %v2045_v58, %v713_v42  ;;  %v1393_v13 = vmul.f32 %v1205_v6, %v2764_v23  ;;  %v1394_v57 = vmul.f32 %v1205_v6, %v2768_v54  ;;  %v977_v51 = vmul.f32 %v2049_v41, %v2944_v62  ;;  %v1103_v22 = vpop.xlane.xlu2 %1102  ;;  %vm1214_vm3 = vmor %vm1212_vm0, %vm1213_vm2 }
 0x297   : > { %v978_v20 = vmul.f32 %v2051_v60, %v914_v1  ;;  %v3009_v0 = vmax.f32 %v1103_v22, 1e-12  ;;  %v1209_v29 = vsub.f32 1.0, %v1208_v59  ;;  %2056 = vrcp.f32 %v915_v25 }
 0x298   : > { %v3012_v26 = vmul.f32 %v2780_v48, %v729_v43  ;;  %1444 = vmatmul.f32.gmra.mxu2 %v1393_v13  ;;  %1571 = vst [vmem:[%s2877_s26 + $0x30] sm:$0xff] %v1393_v13  ;;  %1509 = vmatmul.f32.gmra.mxu3 %v1394_v57  ;;  %v1009_v4 = vsub.f32 2.0, %v977_v51  ;;  %2058 = vrcp.f32 %v916_v8  ;;  %v820_v62 = vmax.f32 %v2947_v39, 0.0 }
 0x299   : > { %1572 = vst [vmem:[%s2877_s26 + $0x38] sm:$0xff] %v1394_v57  ;;  %v1010_v23 = vsub.f32 2.0, %v978_v20  ;;  %v1210_v54 = vmul.f32 %v2047_v36, %v1209_v29  ;;  %v2053_v1 = vpop.eup %2052  ;;  %2060 = vrcp.f32 %v3009_v0  ;;  %v1219_v48 = vor.u32 1.1754944e-38, %v1218_v5 }
 0x29a   : > { %v1041_v32 = vmul.f32 %v2049_v41, %v1009_v4  ;;  %v851_v58 = vmul.f32 %v819_v61, %v2925_v47  ;;  %v698_v35 = vmul.f32 %v2053_v1, %v666_v44  ;;  %v3026_v59 = vmul.f32 %v2789_v21, %v729_v43 }
 0x29b   : > { %v1106_v19 = vpop.xlane.xlu0 %1105  ;;  %v2055_v45 = vpop.eup %2054  ;;  %v1042_v56 = vmul.f32 %v2051_v60, %v1010_v23  ;;  %v1211_v42 = vadd.f32 %v2047_v36, %v1210_v54  ;;  %v3029_v6 = vadd.f32 -0.0025, %v3012_v26  ;;  %v1231_v21 = vand.u32 2147483647, %v2995_v28 }
 0x29c   : > { %v3023_v55 = vmax.f32 %v1106_v19, 1e-12  ;;  %v1223_v39 = vmul.f32 %v2055_v45, %v2995_v28  ;;  %v3032_v41 = vmul.f32 %v1041_v32, %v849_v27  ;;  %v714_v5 = vsub.f32 2.0, %v698_v35 }
 0x29d   : > { %v2057_v47 = vpop.eup %2056  ;;  %v3038_v61 = vmul.f32 %v1042_v56, %v2989_v7  ;;  %v1215_v44 = vsel %vm1214_vm3, %v2047_v36, %v1211_v42  ;;  %vm1228_vm4 = vweird.f32 %v2055_v45  ;;  %vm1227_vm5 = vweird.f32 %v2995_v28 }
 0x29e   : > { %v2059_v60 = vpop.eup %2058  ;;  %v1220_v43 = vsel %vm3015_vm1, %v1219_v48, %v1215_v44  ;;  %v979_v13 = vmul.f32 %v2057_v47, %v915_v25  ;;  %2062 = vrcp.f32 %v3023_v55  ;;  %v1224_v27 = vsub.f32 1.0, %v1223_v39  ;;  %vm1229_vm6 = vmor %vm1227_vm5, %vm1228_vm4 }
 0x29f   : > { %v730_v57 = vmul.f32 %v2053_v1, %v714_v5  ;;  %v1116_v53 = vadd.f32 %v3038_v61, %v3032_v41  ;;  %v1395_v7 = vmul.f32 %v1220_v43, %v2795_v10  ;;  %v1396_v36 = vmul.f32 %v1220_v43, %v2799_v50  ;;  %v3048_v51 = vpop.eup %2060 }
 0x2a0   : > { %v980_v22 = vmul.f32 %v2059_v60, %v916_v8  ;;  %v1011_v20 = vsub.f32 2.0, %v979_v13  ;;  %v1225_v29 = vmul.f32 %v2055_v45, %v1224_v27  ;;  %v3051_v25 = vadd.f32 -0.0025, %v3026_v59 }
 0x2a1   : > { %v3054_v4 = vmul.f32 %v2802_v16, %v730_v57  ;;  %v3057_v9 = vmul.f32 %v2809_v34, %v730_v57  ;;  %1117 = vadd.xlane.f32.xlu1 %v1116_v53  ;;  %1447 = vmatmul.f32.gmra.mxu2 %v1395_v7  ;;  %1573 = vst [vmem:[%s2877_s26 + $0x40] sm:$0xff] %v1395_v7  ;;  %v1233_v10 = vand.u32 2147483648, %v2995_v28  ;;  %v887_v54 = vand.u32 2147483647, %v3029_v6 }
 0x2a2   : > { %1512 = vmatmul.f32.gmra.mxu3 %v1396_v36  ;;  %1574 = vst [vmem:[%s2877_s26 + $0x48] sm:$0xff] %v1396_v36  ;;  %v1012_v50 = vsub.f32 2.0, %v980_v22  ;;  %v1043_v8 = vmul.f32 %v2057_v47, %v1011_v20  ;;  %v1226_v23 = vadd.f32 %v2055_v45, %v1225_v29  ;;  %v1238_v16 = vmul.f32 %v3048_v51, %v3009_v0 }
 0x2a3   : > { %v852_v34 = vmul.f32 %v820_v62, %v2929_v3  ;;  %v1234_v1 = vor.u32 1.1754944e-38, %v1233_v10  ;;  %vm1232_vm7 = vcmp.eq.f32.partialorder %v1231_v21, 8.507059e+37  ;;  %v888_v28 = vand.u32 2147483647, %v3051_v25 }
 0x2a4   : > { %v3068_v32 = vpop.eup %2062  ;;  %v1044_v48 = vmul.f32 %v2059_v60, %v1012_v50  ;;  %v3070_v19 = vmul.f32 %v1043_v8, %v851_v58  ;;  %v1230_v35 = vsel %vm1229_vm6, %v2055_v45, %v1226_v23  ;;  %v3074_v56 = vadd.f32 -0.0025, %v3054_v4 }
 0x2a5   : > { %v3077_v42 = vadd.f32 -0.0025, %v3057_v9  ;;  %v1235_v3 = vsel %vm1232_vm7, %v1234_v1, %v1230_v35  ;;  %v917_v45 = vadd.f32 1e-12, %v885_v17  ;;  %v1253_v47 = vmul.f32 %v3068_v32, %v3023_v55 }
 0x2a6   : > { %v3079_v62 = vmul.f32 %v1044_v48, %v852_v34  ;;  %v1397_v39 = vmul.f32 %v1235_v3, %v2812_v15  ;;  %v1398_v58 = vmul.f32 %v1235_v3, %v2814_v30  ;;  %v821_v5 = vmax.f32 %v2977_v63, 0.0 }
 0x2a7   : > { %v918_v44 = vadd.f32 1e-12, %v886_v46  ;;  %v1239_v21 = vsub.f32 1.0, %v1238_v16  ;;  %2064 = vrcp.f32 %v917_v45  ;;  %v1246_v15 = vand.u32 2147483647, %v3009_v0 }
 0x2a8   : > { %v1119_v60 = vadd.f32 %v3079_v62, %v3070_v19  ;;  %1575 = vst [vmem:[%s2877_s26 + $0x50] sm:$0xff] %v1397_v39  ;;  %v1248_v30 = vand.u32 2147483648, %v3009_v0  ;;  %v889_v17 = vand.u32 2147483647, %v3074_v56  ;;  %vm1243_vm8 = vweird.f32 %v3048_v51 }
 0x2a9   : > { %1450 = vmatmul.f32.gmra.mxu2 %v1397_v39  ;;  %1576 = vst [vmem:[%s2877_s26 + $0x58] sm:$0xff] %v1398_v58  ;;  %2066 = vrcp.f32 %v918_v44  ;;  %v1240_v63 = vmul.f32 %v3048_v51, %v1239_v21  ;;  %v890_v46 = vand.u32 2147483647, %v3077_v42  ;;  %v919_v43 = vadd.f32 1e-12, %v887_v54 }
 0x2aa   : > { %1120 = vadd.xlane.f32.xlu2 %v1119_v60  ;;  %1515 = vmatmul.f32.gmra.mxu3 %v1398_v58  ;;  %v920_v13 = vadd.f32 1e-12, %v888_v28  ;;  %vm1242_vm9 = vweird.f32 %v3009_v0  ;;  %vm1247_vm10 = vcmp.eq.f32.partialorder %v1246_v15, 8.507059e+37  ;;  %v1254_v57 = vsub.f32 1.0, %v1253_v47 }
 0x2ab   : > { %v1241_v27 = vadd.f32 %v3048_v51, %v1240_v63  ;;  %vm1244_vm11 = vmor %vm1242_vm9, %vm1243_vm8  ;;  %v1249_v53 = vor.u32 1.1754944e-38, %v1248_v30  ;;  %2068 = vrcp.f32 %v919_v43  ;;  %vm1258_vm12 = vweird.f32 %v3068_v32 }
 0x2ac   : > { %v1261_v7 = vand.u32 2147483647, %v3023_v55  ;;  %2070 = vrcp.f32 %v920_v13  ;;  %v1255_v22 = vmul.f32 %v3068_v32, %v1254_v57  ;;  %v1263_v20 = vand.u32 2147483648, %v3023_v55 }
 0x2ad   : > { %v1245_v36 = vsel %vm1244_vm11, %v3048_v51, %v1241_v27  ;;  %v2065_v29 = vpop.eup %2064  ;;  %v822_v0 = vmax.f32 %v2985_v49, 0.0  ;;  %vm1257_vm13 = vweird.f32 %v3023_v55  ;;  %v853_v16 = vmul.f32 %v821_v5, %v2963_v40 }
 0x2ae   : > { %v1250_v10 = vsel %vm1247_vm10, %v1249_v53, %v1245_v36  ;;  %v981_v8 = vmul.f32 %v2065_v29, %v917_v45  ;;  %v1256_v51 = vadd.f32 %v3068_v32, %v1255_v22  ;;  %vm3115_vm14 = vmor %vm1257_vm13, %vm1258_vm12  ;;  %vm1262_vm15 = vcmp.eq.f32.partialorder %v1261_v7, 8.507059e+37 }
 0x2af   : > { %v2067_v50 = vpop.eup %2066  ;;  %v1399_v23 = vmul.f32 %v1250_v10, %v2824_v2  ;;  %v1400_v54 = vmul.f32 %v1250_v10, %v2826_v12  ;;  %v1264_v49 = vor.u32 1.1754944e-38, %v1263_v20  ;;  %v921_v12 = vadd.f32 1e-12, %v889_v17 }
 0x2b0   : > { %v982_v34 = vmul.f32 %v2067_v50, %v918_v44  ;;  %v1013_v55 = vsub.f32 2.0, %v981_v8  ;;  %v1260_v2 = vsel %vm3115_vm14, %v3068_v32, %v1256_v51  ;;  %v922_v48 = vadd.f32 1e-12, %v890_v46 }
 0x2b1   : > { %1453 = vmatmul.f32.gmra.mxu2 %v1399_v23  ;;  %1577 = vst [vmem:[%s2877_s26 + $0x60] sm:$0xff] %v1399_v23  ;;  %v2069_v35 = vpop.eup %2068  ;;  %v854_v40 = vmul.f32 %v822_v0, %v2966_v11  ;;  %v823_v3 = vmax.f32 %v3029_v6, 0.0  ;;  %v1265_v39 = vsel %vm1262_vm15, %v1264_v49, %v1260_v2  ;;  %v824_v21 = vmax.f32 %v3051_v25, 0.0 }
 0x2b2   : > { %v1014_v28 = vsub.f32 2.0, %v982_v34  ;;  %1518 = vmatmul.f32.gmra.mxu3 %v1400_v54  ;;  %1578 = vst [vmem:[%s2877_s26 + $0x68] sm:$0xff] %v1400_v54  ;;  %v2071_v58 = vpop.eup %2070  ;;  %v1045_v45 = vmul.f32 %v2065_v29, %v1013_v55  ;;  %v983_v47 = vmul.f32 %v2069_v35, %v919_v43  ;;  %v1401_v5 = vmul.f32 %v1265_v39, %v2832_v31 }
 0x2b3   : > { %v1402_v32 = vmul.f32 %v1265_v39, %v2834_v38  ;;  %v984_v60 = vmul.f32 %v2071_v58, %v920_v13  ;;  %2072 = vrcp.f32 %v921_v12  ;;  %v855_v17 = vmul.f32 %v823_v3, %v3012_v26 }
 0x2b4   : > { %v1046_v44 = vmul.f32 %v2067_v50, %v1014_v28  ;;  %v3129_v11 = vmul.f32 %v1045_v45, %v853_v16  ;;  %v1015_v15 = vsub.f32 2.0, %v983_v47  ;;  %1579 = vst [vmem:[%s2877_s26 + $0x70] sm:$0xff] %v1401_v5  ;;  %2074 = vrcp.f32 %v922_v48 }
 0x2b5   : > { %v1016_v30 = vsub.f32 2.0, %v984_v60  ;;  %1580 = vst [vmem:[%s2877_s26 + $0x78] sm:$0xff] %v1402_v32  ;;  %v856_v38 = vmul.f32 %v824_v21, %v3026_v59  ;;  %v825_v57 = vmax.f32 %v3074_v56, 0.0  ;;  %v826_v7 = vmax.f32 %v3077_v42, 0.0 }
 0x2b6   : > { %v3132_v6 = vmul.f32 %v1046_v44, %v854_v40  ;;  %v1047_v63 = vmul.f32 %v2069_v35, %v1015_v15 }
 0x2b7   : > { %v1048_v25 = vmul.f32 %v2071_v58, %v1016_v30  ;;  %v857_v20 = vmul.f32 %v825_v57, %v3054_v4  ;;  %v858_v0 = vmul.f32 %v826_v7, %v3057_v9 }
 0x2b8   : > { %v1122_v31 = vadd.f32 %v3132_v6, %v3129_v11  ;;  %v3139_v46 = vmul.f32 %v1047_v63, %v855_v17 }
 0x2b9   : > { %1456 = vmatmul.f32.gmra.mxu2 %v1401_v5  ;;  %v2073_v43 = vpop.eup %2072  ;;  %v3141_v13 = vmul.f32 %v1048_v25, %v856_v38 }
 0x2ba   : > { %1123 = vadd.xlane.f32.xlu0 %v1122_v31  ;;  %1521 = vmatmul.f32.gmra.mxu3 %v1402_v32  ;;  %v2075_v27 = vpop.eup %2074  ;;  %v985_v53 = vmul.f32 %v2073_v43, %v921_v12 }
 0x2bb   : > { %v1125_v26 = vadd.f32 %v3141_v13, %v3139_v46  ;;  %v986_v36 = vmul.f32 %v2075_v27, %v922_v48 }
 0x2bc   : > { %v1017_v59 = vsub.f32 2.0, %v985_v53 }
 0x2bd   : > { %1126 = vadd.xlane.f32.xlu1 %v1125_v26  ;;  %v1018_v22 = vsub.f32 2.0, %v986_v36 }
 0x2be   : > { %v1049_v29 = vmul.f32 %v2073_v43, %v1017_v59 }
 0x2bf   : > { %v1050_v10 = vmul.f32 %v2075_v27, %v1018_v22 }
 0x2c0   : > { %v3149_v50 = vmul.f32 %v1049_v29, %v857_v20 }
 0x2c1   : > { %v3151_v8 = vmul.f32 %v1050_v10, %v858_v0 }
 0x2c3   : > { %v1128_v56 = vadd.f32 %v3151_v8, %v3149_v50 }
 0x2c5   : > { %1129 = vadd.xlane.f32.xlu2 %v1128_v56 }
 0x2ee   : > { %v1109_v23 = vpop.xlane.xlu1 %1108 }
 0x2ef   : > { %v1139_v42 = vmax.f32 %v1109_v23, 1e-12 }
 0x2f1   : > { %2076 = vrcp.f32 %v1139_v42  ;;  %v1278_v9 = vand.u32 2147483648, %v1139_v42  ;;  %v1276_v49 = vand.u32 2147483647, %v1139_v42  ;;  %vm1272_vm1 = vweird.f32 %v1139_v42 }
 0x2f3   : > { %v1279_v35 = vor.u32 1.1754944e-38, %v1278_v9  ;;  %vm1277_vm3 = vcmp.eq.f32.partialorder %v1276_v49, 8.507059e+37 }
 0x2f7   : > { %v2077_v54 = vpop.eup %2076  ;;  %v1112_v51 = vpop.xlane.xlu2 %1111 }
 0x2f8   : > { %v1268_v16 = vmul.f32 %v2077_v54, %v1139_v42  ;;  %v1140_v4 = vmax.f32 %v1112_v51, 1e-12  ;;  %vm1273_vm0 = vweird.f32 %v2077_v54 }
 0x2f9   : > { %vm1274_vm2 = vmor %vm1272_vm1, %vm1273_vm0 }
 0x2fa   : > { %2078 = vrcp.f32 %v1140_v4  ;;  %v1269_v34 = vsub.f32 1.0, %v1268_v16  ;;  %v1293_v32 = vand.u32 2147483648, %v1140_v4  ;;  %v1291_v60 = vand.u32 2147483647, %v1140_v4 }
 0x2fb   : > { %vm1287_vm5 = vweird.f32 %v1140_v4 }
 0x2fc   : > { %v1270_v1 = vmul.f32 %v2077_v54, %v1269_v34  ;;  %vm1292_vm7 = vcmp.eq.f32.partialorder %v1291_v60, 8.507059e+37 }
 0x2fd   : > { %v1436_v55 = vpop.f32.mrf.mxu2  ;;  %v1501_v2 = vpop.f32.mrf.mxu3 }
 0x2fe   : > { %v1502_v12 = vadd.f32 %v1501_v2, %v1436_v55  ;;  %v1271_v48 = vadd.f32 %v2077_v54, %v1270_v1 }
 0x300   : > { %v2079_v40 = vpop.eup %2078  ;;  %1549 = vst [vmem:[%s3157_s6] sm:$0xff] %v1502_v12  ;;  %v1275_v28 = vsel %vm1274_vm2, %v2077_v54, %v1271_v48 }
 0x301   : > { %v1283_v3 = vmul.f32 %v2079_v40, %v1140_v4  ;;  %v1280_v39 = vsel %vm1277_vm3, %v1279_v35, %v1275_v28  ;;  %vm1288_vm4 = vweird.f32 %v2079_v40 }
 0x302   : > { %v1403_v58 = vmul.f32 %v1280_v39, %v2859_v18  ;;  %v1404_v45 = vmul.f32 %v1280_v39, %v2865_v14  ;;  %vm1289_vm6 = vmor %vm1287_vm5, %vm1288_vm4  ;;  %v1294_v14 = vor.u32 1.1754944e-38, %v1293_v32 }
 0x303   : > { %v1284_v47 = vsub.f32 1.0, %v1283_v3  ;;  %v1115_v5 = vpop.xlane.xlu0 %1114 }
 0x304   : > { %1459 = vmatmul.f32.gmra.mxu2 %v1403_v58  ;;  %1581 = vst [vmem:[%s2877_s26 + $0x80] sm:$0xff] %v1403_v58  ;;  %1524 = vmatmul.f32.gmra.mxu3 %v1404_v45  ;;  %v1141_v44 = vmax.f32 %v1115_v5, 1e-12 }
 0x305   : > { %1582 = vst [vmem:[%s2877_s26 + $0x88] sm:$0xff] %v1404_v45  ;;  %v1285_v21 = vmul.f32 %v2079_v40, %v1284_v47 }
 0x306   : > { %2080 = vrcp.f32 %v1141_v44  ;;  %v1308_v26 = vand.u32 2147483648, %v1141_v44  ;;  %v1306_v59 = vand.u32 2147483647, %v1141_v44  ;;  %vm1302_vm9 = vweird.f32 %v1141_v44 }
 0x307   : > { %v1286_v15 = vadd.f32 %v2079_v40, %v1285_v21 }
 0x308   : > { %v1439_v30 = vpop.f32.mrf.mxu2  ;;  %v1504_v18 = vpop.f32.mrf.mxu3  ;;  %vm1307_vm11 = vcmp.eq.f32.partialorder %v1306_v59, 8.507059e+37 }
 0x309   : > { %v1505_v17 = vadd.f32 %v1504_v18, %v1439_v30  ;;  %v1290_v63 = vsel %vm1289_vm6, %v2079_v40, %v1286_v15 }
 0x30a   : > { %v1295_v31 = vsel %vm1292_vm7, %v1294_v14, %v1290_v63 }
 0x30b   : > { %1550 = vst [vmem:[%s3157_s6 + $0x8] sm:$0xff] %v1505_v17  ;;  %v1405_v38 = vmul.f32 %v1295_v31, %v2897_v33  ;;  %v1406_v25 = vmul.f32 %v1295_v31, %v2902_v52  ;;  %v1309_v52 = vor.u32 1.1754944e-38, %v1308_v26 }
 0x30c   : > { %v2081_v43 = vpop.eup %2080 }
 0x30d   : > { %1462 = vmatmul.f32.gmra.mxu2 %v1405_v38  ;;  %1583 = vst [vmem:[%s2877_s26 + $0x90] sm:$0xff] %v1405_v38  ;;  %1527 = vmatmul.f32.gmra.mxu3 %v1406_v25  ;;  %v1298_v27 = vmul.f32 %v2081_v43, %v1141_v44  ;;  %vm1303_vm8 = vweird.f32 %v2081_v43 }
 0x30e   : > { %1584 = vst [vmem:[%s2877_s26 + $0x98] sm:$0xff] %v1406_v25  ;;  %vm1304_vm10 = vmor %vm1302_vm9, %vm1303_vm8 }
 0x30f   : > { %v1299_v57 = vsub.f32 1.0, %v1298_v27 }
 0x311   : > { %v1442_v53 = vpop.f32.mrf.mxu2  ;;  %v1300_v36 = vmul.f32 %v2081_v43, %v1299_v57 }
 0x312   : > { %v1507_v7 = vpop.f32.mrf.mxu3 }
 0x313   : > { %v1508_v22 = vadd.f32 %v1507_v7, %v1442_v53  ;;  %v1301_v20 = vadd.f32 %v2081_v43, %v1300_v36 }
 0x314   : > { %v1118_v33 = vpop.xlane.xlu1 %1117 }
 0x315   : > { %1551 = vst [vmem:[%s3157_s6 + $0x10] sm:$0xff] %v1508_v22  ;;  %v1142_v29 = vmax.f32 %v1118_v33, 1e-12  ;;  %v1305_v0 = vsel %vm1304_vm10, %v2081_v43, %v1301_v20 }
 0x316   : > { %v1310_v10 = vsel %vm1307_vm11, %v1309_v52, %v1305_v0 }
 0x317   : > { %2082 = vrcp.f32 %v1142_v29  ;;  %v1407_v56 = vmul.f32 %v1310_v10, %v2953_v37  ;;  %v1408_v23 = vmul.f32 %v1310_v10, %v2959_v24  ;;  %v1323_v49 = vand.u32 2147483648, %v1142_v29 }
 0x318   : > { %v1321_v37 = vand.u32 2147483647, %v1142_v29  ;;  %vm1317_vm13 = vweird.f32 %v1142_v29 }
 0x319   : > { %1465 = vmatmul.f32.gmra.mxu2 %v1407_v56  ;;  %1585 = vst [vmem:[%s2877_s26 + $0xa0] sm:$0xff] %v1407_v56  ;;  %1530 = vmatmul.f32.gmra.mxu3 %v1408_v23  ;;  %v1324_v12 = vor.u32 1.1754944e-38, %v1323_v49 }
 0x31a   : > { %1586 = vst [vmem:[%s2877_s26 + $0xa8] sm:$0xff] %v1408_v23  ;;  %vm1322_vm15 = vcmp.eq.f32.partialorder %v1321_v37, 8.507059e+37 }
 0x31b   : > { %v1445_v42 = vpop.f32.mrf.mxu2  ;;  %v1510_v54 = vpop.f32.mrf.mxu3 }
 0x31c   : > { %v1511_v51 = vadd.f32 %v1510_v54, %v1445_v42 }
 0x31d   : > { %v2083_v16 = vpop.eup %2082  ;;  %v1121_v4 = vpop.xlane.xlu2 %1120 }
 0x31e   : > { %v1313_v34 = vmul.f32 %v2083_v16, %v1142_v29  ;;  %v1143_v9 = vmax.f32 %v1121_v4, 1e-12  ;;  %1552 = vst [vmem:[%s3157_s6 + $0x18] sm:$0xff] %v1511_v51  ;;  %vm1318_vm12 = vweird.f32 %v2083_v16 }
 0x31f   : > { %vm1319_vm14 = vmor %vm1317_vm13, %vm1318_vm12 }
 0x320   : > { %2084 = vrcp.f32 %v1143_v9  ;;  %v1314_v1 = vsub.f32 1.0, %v1313_v34  ;;  %v1338_v5 = vand.u32 2147483648, %v1143_v9  ;;  %v1336_v44 = vand.u32 2147483647, %v1143_v9 }
 0x321   : > { %vm1332_vm1 = vweird.f32 %v1143_v9 }
 0x322   : > { %v1315_v55 = vmul.f32 %v2083_v16, %v1314_v1  ;;  %vm1337_vm3 = vcmp.eq.f32.partialorder %v1336_v44, 8.507059e+37 }
 0x324   : > { %v1316_v24 = vadd.f32 %v2083_v16, %v1315_v55  ;;  %v1448_v2 = vpop.f32.mrf.mxu2 }
 0x325   : > { %v1513_v48 = vpop.f32.mrf.mxu3 }
 0x326   : > { %v2085_v35 = vpop.eup %2084  ;;  %v1320_v40 = vsel %vm1319_vm14, %v2083_v16, %v1316_v24  ;;  %v1514_v28 = vadd.f32 %v1513_v48, %v1448_v2 }
 0x327   : > { %v1328_v3 = vmul.f32 %v2085_v35, %v1143_v9  ;;  %v1325_v39 = vsel %vm1322_vm15, %v1324_v12, %v1320_v40  ;;  %vm1333_vm0 = vweird.f32 %v2085_v35 }
 0x328   : > { %v1409_v58 = vmul.f32 %v1325_v39, %v3032_v41  ;;  %v1410_v45 = vmul.f32 %v1325_v39, %v3038_v61  ;;  %1553 = vst [vmem:[%s3157_s6 + $0x20] sm:$0xff] %v1514_v28  ;;  %vm1334_vm2 = vmor %vm1332_vm1, %vm1333_vm0  ;;  %v1339_v61 = vor.u32 1.1754944e-38, %v1338_v5 }
 0x329   : > { %v1329_v47 = vsub.f32 1.0, %v1328_v3 }
 0x32a   : > { %1468 = vmatmul.f32.gmra.mxu2 %v1409_v58  ;;  %1587 = vst [vmem:[%s2877_s26 + $0xb0] sm:$0xff] %v1409_v58  ;;  %1533 = vmatmul.f32.gmra.mxu3 %v1410_v45 }
 0x32b   : > { %1588 = vst [vmem:[%s2877_s26 + $0xb8] sm:$0xff] %v1410_v45  ;;  %v1330_v32 = vmul.f32 %v2085_v35, %v1329_v47 }
 0x32c   : > { %v1451_v21 = vpop.f32.mrf.mxu2 }
 0x32d   : > { %v1124_v60 = vpop.xlane.xlu0 %1123  ;;  %v1331_v15 = vadd.f32 %v2085_v35, %v1330_v32  ;;  %v1516_v30 = vpop.f32.mrf.mxu3 }
 0x32e   : > { %v1144_v41 = vmax.f32 %v1124_v60, 1e-12  ;;  %v1517_v18 = vadd.f32 %v1516_v30, %v1451_v21 }
 0x32f   : > { %v1335_v14 = vsel %vm1334_vm2, %v2085_v35, %v1331_v15 }
 0x330   : > { %2086 = vrcp.f32 %v1144_v41  ;;  %v1340_v17 = vsel %vm1337_vm3, %v1339_v61, %v1335_v14  ;;  %1554 = vst [vmem:[%s3157_s6 + $0x28] sm:$0xff] %v1517_v18  ;;  %v1127_v63 = vpop.xlane.xlu1 %1126  ;;  %v1351_v20 = vand.u32 2147483647, %v1144_v41  ;;  %vm1347_vm5 = vweird.f32 %v1144_v41 }
 0x331   : > { %v1411_v31 = vmul.f32 %v1340_v17, %v3070_v19  ;;  %v1412_v38 = vmul.f32 %v1340_v17, %v3079_v62  ;;  %v1145_v25 = vmax.f32 %v1127_v63, 1e-12  ;;  %v1353_v19 = vand.u32 2147483648, %v1144_v41 }
 0x332   : > { %vm1352_vm7 = vcmp.eq.f32.partialorder %v1351_v20, 8.507059e+37 }
 0x333   : > { %1471 = vmatmul.f32.gmra.mxu2 %v1411_v31  ;;  %1589 = vst [vmem:[%s2877_s26 + $0xc0] sm:$0xff] %v1411_v31  ;;  %1536 = vmatmul.f32.gmra.mxu3 %v1412_v38  ;;  %2088 = vrcp.f32 %v1145_v25  ;;  %v1354_v56 = vor.u32 1.1754944e-38, %v1353_v19  ;;  %v1368_v23 = vand.u32 2147483648, %v1145_v25  ;;  %v1366_v16 = vand.u32 2147483647, %v1145_v25 }
 0x334   : > { %1590 = vst [vmem:[%s2877_s26 + $0xc8] sm:$0xff] %v1412_v38  ;;  %v1454_v43 = vpop.f32.mrf.mxu2  ;;  %vm1362_vm9 = vweird.f32 %v1145_v25 }
 0x335   : > { %v1519_v27 = vpop.f32.mrf.mxu3  ;;  %v1369_v55 = vor.u32 1.1754944e-38, %v1368_v23  ;;  %vm1367_vm11 = vcmp.eq.f32.partialorder %v1366_v16, 8.507059e+37 }
 0x336   : > { %v2087_v57 = vpop.eup %2086  ;;  %v1520_v53 = vadd.f32 %v1519_v27, %v1454_v43 }
 0x337   : > { %v1343_v26 = vmul.f32 %v2087_v57, %v1144_v41  ;;  %vm1348_vm4 = vweird.f32 %v2087_v57 }
 0x338   : > { %1555 = vst [vmem:[%s3157_s6 + $0x30] sm:$0xff] %v1520_v53  ;;  %v1130_v36 = vpop.xlane.xlu2 %1129  ;;  %vm1349_vm6 = vmor %vm1347_vm5, %vm1348_vm4 }
 0x339   : > { %v1344_v7 = vsub.f32 1.0, %v1343_v26  ;;  %v2089_v59 = vpop.eup %2088  ;;  %v1146_v22 = vmax.f32 %v1130_v36, 1e-12 }
 0x33a   : > { %v1358_v33 = vmul.f32 %v2089_v59, %v1145_v25  ;;  %vm1363_vm8 = vweird.f32 %v2089_v59 }
 0x33b   : > { %v1345_v62 = vmul.f32 %v2087_v57, %v1344_v7  ;;  %2090 = vrcp.f32 %v1146_v22  ;;  %vm1364_vm10 = vmor %vm1362_vm9, %vm1363_vm8  ;;  %v1383_v48 = vand.u32 2147483648, %v1146_v22  ;;  %v1381_v40 = vand.u32 2147483647, %v1146_v22 }
 0x33c   : > { %v1457_v52 = vpop.f32.mrf.mxu2  ;;  %v1359_v29 = vsub.f32 1.0, %v1358_v33  ;;  %vm1377_vm13 = vweird.f32 %v1146_v22 }
 0x33d   : > { %v1346_v0 = vadd.f32 %v2087_v57, %v1345_v62  ;;  %v1522_v10 = vpop.f32.mrf.mxu3  ;;  %v1384_v3 = vor.u32 1.1754944e-38, %v1383_v48  ;;  %vm1382_vm15 = vcmp.eq.f32.partialorder %v1381_v40, 8.507059e+37 }
 0x33e   : > { %v1523_v42 = vadd.f32 %v1522_v10, %v1457_v52  ;;  %v1360_v51 = vmul.f32 %v2089_v59, %v1359_v29 }
 0x33f   : > { %v1350_v54 = vsel %vm1349_vm6, %v2087_v57, %v1346_v0 }
 0x340   : > { %v1355_v4 = vsel %vm1352_vm7, %v1354_v56, %v1350_v54  ;;  %1556 = vst [vmem:[%s3157_s6 + $0x38] sm:$0xff] %v1523_v42  ;;  %v1361_v1 = vadd.f32 %v2089_v59, %v1360_v51 }
 0x341   : > { %v1413_v34 = vmul.f32 %v1355_v4, %v3129_v11  ;;  %v1414_v9 = vmul.f32 %v1355_v4, %v3132_v6  ;;  %v2091_v49 = vpop.eup %2090 }
 0x342   : > { %v1373_v37 = vmul.f32 %v2091_v49, %v1146_v22  ;;  %v1365_v24 = vsel %vm1364_vm10, %v2089_v59, %v1361_v1  ;;  %vm1378_vm12 = vweird.f32 %v2091_v49 }
 0x343   : > { %1474 = vmatmul.f32.gmra.mxu2 %v1413_v34  ;;  %1591 = vst [vmem:[%s2877_s26 + $0xd0] sm:$0xff] %v1413_v34  ;;  %1539 = vmatmul.f32.gmra.mxu3 %v1414_v9  ;;  %v1370_v2 = vsel %vm1367_vm11, %v1369_v55, %v1365_v24  ;;  %vm1379_vm14 = vmor %vm1377_vm13, %vm1378_vm12 }
 0x344   : > { %1592 = vst [vmem:[%s2877_s26 + $0xd8] sm:$0xff] %v1414_v9  ;;  %v1374_v12 = vsub.f32 1.0, %v1373_v37  ;;  %v1415_v11 = vmul.f32 %v1370_v2, %v3139_v46  ;;  %v1416_v6 = vmul.f32 %v1370_v2, %v3141_v13 }
 0x346   : > { %1593 = vst [vmem:[%s2877_s26 + $0xe0] sm:$0xff] %v1415_v11  ;;  %v1375_v35 = vmul.f32 %v2091_v49, %v1374_v12 }
 0x347   : > { %1594 = vst [vmem:[%s2877_s26 + $0xe8] sm:$0xff] %v1416_v6 }
 0x348   : > { %v1376_v28 = vadd.f32 %v2091_v49, %v1375_v35 }
 0x34a   : > { %v1380_v46 = vsel %vm1379_vm14, %v2091_v49, %v1376_v28 }
 0x34b   : > { %1477 = vmatmul.f32.gmra.mxu2 %v1415_v11  ;;  %1542 = vmatmul.f32.gmra.mxu3 %v1416_v6  ;;  %v1385_v13 = vsel %vm1382_vm15, %v1384_v3, %v1380_v46 }
 0x34c   : > { %v1417_v39 = vmul.f32 %v1385_v13, %v3149_v50  ;;  %v1418_v58 = vmul.f32 %v1385_v13, %v3151_v8 }
 0x34e   : > { %1595 = vst [vmem:[%s2877_s26 + $0xf0] sm:$0xff] %v1417_v39 }
 0x34f   : > { %1596 = vst [vmem:[%s2877_s26 + $0xf8] sm:$0xff] %v1418_v58 }
 0x353   : > { %1480 = vmatmul.f32.gmra.mxu2 %v1417_v39  ;;  %1545 = vmatmul.f32.gmra.mxu3 %v1418_v58 }
 0x354   : > { %2209 = shalt.err (!%p2206_p10)
}
 0x355   : > { %s2292_s26 = smov 256   ;;  %s2293_s7 = smov 16  }
 0x356   : > { %1831 = dma.vmem_to_hbm [thread:$0]  (%p2392_p3), %s1634_s11, 4096, %s1636_s27, %s1603_s25, %s2292_s26, %s2292_s26, %s2293_s7  }
 0x357   : > { %s1817_s8 = sshll.u32 %s2342_s19, 7  ;;  %s1615_s27 = sshll.u32 %s3157_s6, 4  ;;  %s1616_s27 = int_to_ptr.vmem [resolvable:$true] %s1615_s27 }
 0x358   : > { %s1614_s11 = scalar_lea.hbm %s3259_s3, %s1817_s8  ;;  %s1598_s28 = scalar_lea.sflag [#allocation4], %s2422_s24 }
 0x359   : > { %s1617_s25 = sshll.u32 %s1614_s11, 4  ;;  %s2230_s13 = scalar_lea.hbm %s3259_s3, 384  ;;  %s1618_s25 = int_to_ptr.hbm [resolvable:$true] %s1617_s25 }
 0x35a   : > { %s2224_s29 = sshra.s32 %s1618_s25, 4  ;;  %s2225_s29 = int_to_ptr.hbm [resolvable:$true] %s2224_s29 }
 0x35b   : > { %s2226_s19 = scalar_lea.hbm %s2225_s29, 128  ;;  %p2231_p0 = scmp.lt.s32.totalorder %s2225_s29, %s3259_s3 }
 0x35c   : > { %p2227_p11 = scmp.ne.s32.totalorder %s2225_s29, %s2226_s19  ;;  %p2232_p5 = scmp.lt.s32.totalorder %s2230_s13, %s2226_s19 }
 0x35e   : > { %p2228_p12 = pnand %p2227_p11, %p2392_p3  ;;  %p2233_p1 = por %p2232_p5, %p2231_p0 }
 0x360   : > { %p2229_p13 = pneg %p2228_p12 }
 0x362   : > { %p2234_p4 = pnand %p2233_p1, %p2229_p13 }
 0x387   : > { %v1460_v50 = vpop.f32.mrf.mxu2  ;;  %v1525_v8 = vpop.f32.mrf.mxu3 }
 0x388   : > { %v1526_v45 = vadd.f32 %v1525_v8, %v1460_v50 }
 0x38a   : > { %1557 = vst [vmem:[%s3157_s6 + $0x40] sm:$0xff] %v1526_v45 }
 0x390   : > { %v1463_v47 = vpop.f32.mrf.mxu2  ;;  %v1528_v5 = vpop.f32.mrf.mxu3 }
 0x391   : > { %v1529_v32 = vadd.f32 %v1528_v5, %v1463_v47 }
 0x393   : > { %1558 = vst [vmem:[%s3157_s6 + $0x48] sm:$0xff] %v1529_v32 }
 0x39c   : > { %v1466_v44 = vpop.f32.mrf.mxu2  ;;  %v1531_v21 = vpop.f32.mrf.mxu3 }
 0x39d   : > { %v1532_v60 = vadd.f32 %v1531_v21, %v1466_v44 }
 0x39f   : > { %1559 = vst [vmem:[%s3157_s6 + $0x50] sm:$0xff] %v1532_v60 }
 0x3ad   : > { %v1469_v15 = vpop.f32.mrf.mxu2  ;;  %v1534_v30 = vpop.f32.mrf.mxu3 }
 0x3ae   : > { %v1535_v41 = vadd.f32 %v1534_v30, %v1469_v15 }
 0x3b0   : > { %1560 = vst [vmem:[%s3157_s6 + $0x58] sm:$0xff] %v1535_v41 }
 0x3b6   : > { %v1472_v61 = vpop.f32.mrf.mxu2  ;;  %v1537_v18 = vpop.f32.mrf.mxu3 }
 0x3b7   : > { %v1538_v14 = vadd.f32 %v1537_v18, %v1472_v61 }
 0x3b9   : > { %1561 = vst [vmem:[%s3157_s6 + $0x60] sm:$0xff] %v1538_v14 }
 0x3c6   : > { %v1475_v17 = vpop.f32.mrf.mxu2  ;;  %v1540_v63 = vpop.f32.mrf.mxu3 }
 0x3c7   : > { %v1541_v31 = vadd.f32 %v1540_v63, %v1475_v17 }
 0x3c9   : > { %1562 = vst [vmem:[%s3157_s6 + $0x68] sm:$0xff] %v1541_v31 }
 0x3ce   : > { %v1478_v38 = vpop.f32.mrf.mxu2  ;;  %v1543_v25 = vpop.f32.mrf.mxu3 }
 0x3cf   : > { %v1544_v43 = vadd.f32 %v1543_v25, %v1478_v38 }
 0x3d1   : > { %1563 = vst [vmem:[%s3157_s6 + $0x70] sm:$0xff] %v1544_v43 }
 0x3d6   : > { %v1481_v27 = vpop.f32.mrf.mxu2  ;;  %v1546_v57 = vpop.f32.mrf.mxu3 }
 0x3d7   : > { %v1547_v53 = vadd.f32 %v1546_v57, %v1481_v27 }
 0x3d9   : > { %1564 = vst [vmem:[%s3157_s6 + $0x78] sm:$0xff] %v1547_v53 }
 0x3da   : > { %2237 = shalt.err (!%p2234_p4)
}
 0x3db   : > { %s2294_s24 = smov 128   ;;  %s2295_s6 = smov 8  }
 0x3dc   : > { %1830 = dma.vmem_to_hbm [thread:$0]  (%p2392_p3), %s1616_s27, 2048, %s1618_s25, %s1598_s28, %s2294_s24, %s2294_s24, %s2295_s6  }
 0x3dd PF: > { %p1857_p8 = scmp.ge.s32.totalorder %s2284_s18, 2  ;;  %s1650_s26 = sand.u32 1, %s2272_s15  }
 0x3de   : > { %s1651_s7 = scalar_lea.sflag [#allocation4], %s1650_s26 }
 0x3df   : > { %p1846_p7 = pnand %p1857_p8, %p2356_p6 }
 0x3e1   : > { %p1847_p2 = pneg %p1846_p7 }
 0x3e3   : > { %2263 = dma.done.wait (%p1847_p2), %s1651_s7, 2048  }
 0x3e4   : > { %2265 = vsyncadd (%p1847_p2), %s1651_s7, 4294965248  ;;  %s1661_s8 = scalar_lea.sflag [#allocation10], %s1650_s26 }
 0x3e5   : > { %2267 = dma.done.wait (%p1847_p2), %s1661_s8, 4096  }
 0x3e6   : > { %2269 = vsyncadd (%p1847_p2), %s1661_s8, 4294963200  ;;  %p22_p3 = scmp.ge.s32.totalorder %s2379_s12, 5   ;;  %s3276_s15 = smov %s2276_s16 }
 0x3e7   : > { %s3277_s16 = smov %s2280_s17  ;;  %s3278_s17 = smov %s2388_s20 }
 0x3e8   : > { %s3279_s18 = smov %s2379_s12  ;;  %24 = sbr.rel (!%p22_p3) target bundleno = 8 (0x8), region = 102 }
 0x3ed   :  { %1667 = vsyncpa [#allocation3], 1 }
 0x3ee   :  { %1669 = vsyncpa [#allocation3 + $0x1], 1 }
 0x3ef   :  { %1670 = vsyncpa [#allocation6], 1 }
 0x3f0   :  { %1671 = vsyncpa [#allocation4], 1 }
 0x3f1   :  { %1673 = vsyncpa [#allocation4 + $0x1], 1 }
 0x3f2   :  { %1674 = vsyncpa [#allocation10], 1 }
 0x3f3   :  { %1676 = vsyncpa [#allocation10 + $0x1], 1 }

</bundles_post_ra>
